<compile_context>
chip_gen: v7x
topology: tpu7x:2x2x1
jax: 0.10.0
libtpu: 0.0.40
codegen_flags: <defaults>
</compile_context>

<pallas_src>
import jax
import jax.numpy as jnp
from jax.experimental import pallas as pl
from jax.experimental.pallas import tpu as pltpu


def trunk_kernel(z_ref, lbl_ref,
                 w1z_ref, w1y_ref, b1_ref,
                 w2_ref, b2_ref,
                 w3_ref, b3_ref,
                 w4_ref, b4_ref,
                 h_ref):
    """fc1..fc4 with ReLUs, computed exactly once (no grid). bf16 MXU operands,
    f32 accumulation/bias; result stored as bf16 for the fc5 kernel."""
    # fc1 with the concat folded in: cat(z, labels) @ W1 == z @ W1[:zd] + labels @ W1[zd:]
    h = (jnp.dot(z_ref[...], w1z_ref[...], preferred_element_type=jnp.float32)
         + jnp.dot(lbl_ref[...], w1y_ref[...], preferred_element_type=jnp.float32)
         + b1_ref[...])
    h = jnp.maximum(h, 0.0)

    h = jnp.dot(h.astype(jnp.bfloat16), w2_ref[...],
                preferred_element_type=jnp.float32) + b2_ref[...]
    h = jnp.maximum(h, 0.0)

    h = jnp.dot(h.astype(jnp.bfloat16), w3_ref[...],
                preferred_element_type=jnp.float32) + b3_ref[...]
    h = jnp.maximum(h, 0.0)

    h = jnp.dot(h.astype(jnp.bfloat16), w4_ref[...],
                preferred_element_type=jnp.float32) + b4_ref[...]
    h = jnp.maximum(h, 0.0)

    h_ref[...] = h.astype(jnp.bfloat16)


def fc5_kernel(h_ref, w5_ref, b5_ref, out_ref):
    """One grid step: one TN-wide column tile of sigmoid(h @ W5 + b5).
    h is a constant-index full block (DMA'd once, VMEM-resident)."""
    logits = jnp.dot(h_ref[...], w5_ref[...],
                     preferred_element_type=jnp.float32) + b5_ref[...]
    out_ref[...] = jax.nn.sigmoid(logits)


def _pick_tn(out_dim):
    """fc5 output-column tile. v5e/v6e (single TC): 1024 -> 3 grid steps (min for
    2-deep buffering, least per-step overhead). v7x / unknown: 512 -> 3 steps per
    TensorCore under megacore "parallel" sharding."""
    try:
        kind = jax.devices()[0].device_kind.lower()
    except Exception:  # pragma: no cover - defensive; default tiling is valid everywhere
        kind = ""
    tn = 1024 if ("v5" in kind or "v6" in kind) else 512
    if out_dim % tn != 0:
        tn = 512
    assert out_dim % tn == 0
    return tn
    # TODO(synk): on v5e/v6e an int8-quantized w5 (per-column scales) would halve the
    # dominant weight stream again; skipped here to keep numerics identical across gens.


def generator_forward(z, labels, params):
    """Matches Generator.forward: concat -> fc1..fc4 (relu) -> fc5 (sigmoid) -> unflatten."""
    B, z_dim = z.shape
    nc = labels.shape[1]
    hid = params["w4"].shape[1]       # 1024
    out_dim = params["w5"].shape[1]   # 3 * 32 * 32
    tn = _pick_tn(out_dim)
    n_tiles = out_dim // tn

    # bf16 MXU operands; f32 biases and f32 accumulation keep numerics tight.
    zb = z.astype(jnp.bfloat16)
    lb = labels.astype(jnp.bfloat16)
    w1 = params["w1"].astype(jnp.bfloat16)
    w1z, w1y = w1[:z_dim, :], w1[z_dim:, :]            # fold torch.cat into two dots
    w2 = params["w2"].astype(jnp.bfloat16)
    w3 = params["w3"].astype(jnp.bfloat16)
    w4 = params["w4"].astype(jnp.bfloat16)
    w5 = params["w5"].astype(jnp.bfloat16)
    b1 = params["b1"].astype(jnp.float32)
    b2 = params["b2"].astype(jnp.float32)
    b3 = params["b3"].astype(jnp.float32)
    b4 = params["b4"].astype(jnp.float32)
    b5 = params["b5"].astype(jnp.float32)

    # --- Pass 1: tiny fc1..fc4 trunk, computed once (no grid, everything VMEM-resident).
    h = pl.pallas_call(
        trunk_kernel,
        out_shape=jax.ShapeDtypeStruct((B, hid), jnp.bfloat16),
        compiler_params=pltpu.CompilerParams(
            vmem_limit_bytes=32 * 1024 * 1024,
        ),
    )(zb, lb, w1z, w1y, b1, w2, b2, w3, b3, w4, b4)

    # --- Pass 2: fc5 tiled over its output columns; w5/b5/out tiles are streamed and
    # double-buffered by Pallas, h is a constant-index full block (DMA'd once).
    flat = pl.pallas_call(
        fc5_kernel,
        out_shape=jax.ShapeDtypeStruct((B, out_dim), jnp.float32),
        grid=(n_tiles,),
        in_specs=[
            pl.BlockSpec((B, hid), lambda j: (0, 0)),           # h: resident every step
            pl.BlockSpec((hid, tn), lambda j: (0, j)),          # stream w5 column tiles
            pl.BlockSpec((1, tn), lambda j: (0, j)),            # stream b5 tiles
        ],
        out_specs=pl.BlockSpec((B, tn), lambda j: (0, j)),
        compiler_params=pltpu.CompilerParams(
            dimension_semantics=("parallel",),     # split the w5 stream across v7x's 2 TCs
            vmem_limit_bytes=32 * 1024 * 1024,     # actual footprint ~6 MiB; valid on all gens
        ),
    )(h, w5, b5)

    # Glue: nn.Unflatten(1, (3, 32, 32)) -> NCHW.
    return flat.reshape(B, 3, 32, 32)


def init_params(key, z_dim, num_classes):
    """Deterministic synthetic init (shapes match the PyTorch module's __init__)."""
    dims = [z_dim + num_classes, 128, 256, 512, 1024, 3 * 32 * 32]
    params = {}
    keys = jax.random.split(key, 2 * (len(dims) - 1))
    for i in range(len(dims) - 1):
        fan_in, fan_out = dims[i], dims[i + 1]
        bound = 1.0 / jnp.sqrt(jnp.float32(fan_in))
        # Stored as [in, out]; kernels compute x @ W + b.
        params[f"w{i+1}"] = jax.random.uniform(
            keys[2 * i], (fan_in, fan_out), jnp.float32, -bound, bound)
        params[f"b{i+1}"] = jax.random.uniform(
            keys[2 * i + 1], (1, fan_out), jnp.float32, -bound, bound)
    return params


def generator_reference_bf16(z, labels, params):
    """Pure-JAX reference mimicking the kernels' mixed precision (bf16 operands, f32 accum)."""
    def mm(a, w):
        return jnp.dot(a.astype(jnp.bfloat16), w.astype(jnp.bfloat16),
                       preferred_element_type=jnp.float32)
    x = jnp.concatenate([z, labels], axis=1).astype(jnp.float32)
    h = jnp.maximum(mm(x, params["w1"]) + params["b1"], 0.0)
    h = jnp.maximum(mm(h, params["w2"]) + params["b2"], 0.0)
    h = jnp.maximum(mm(h, params["w3"]) + params["b3"], 0.0)
    h = jnp.maximum(mm(h, params["w4"]) + params["b4"], 0.0)
    h = jax.nn.sigmoid(mm(h, params["w5"]) + params["b5"])
    return h.reshape(x.shape[0], 3, 32, 32)


def generator_reference_f32(z, labels, params):
    """Full-f32 reference (semantics of the original PyTorch module)."""
    x = jnp.concatenate([z, labels], axis=1).astype(jnp.float32)
    h = jnp.maximum(x @ params["w1"] + params["b1"], 0.0)
    h = jnp.maximum(h @ params["w2"] + params["b2"], 0.0)
    h = jnp.maximum(h @ params["w3"] + params["b3"], 0.0)
    h = jnp.maximum(h @ params["w4"] + params["b4"], 0.0)
    h = jax.nn.sigmoid(h @ params["w5"] + params["b5"])
    return h.reshape(x.shape[0], 3, 32, 32)


if __name__ == "__main__":
    z_dim = 32
    num_classes = 10
    batch = 8

    key = jax.random.PRNGKey(0)
    k_params, k_z, k_lbl = jax.random.split(key, 3)

    params = init_params(k_params, z_dim, num_classes)
    z = jax.random.normal(k_z, (batch, z_dim), jnp.float32)
    label_ids = jax.random.randint(k_lbl, (batch,), 0, num_classes)
    labels = jax.nn.one_hot(label_ids, num_classes, dtype=jnp.float32)

    out = jax.block_until_ready(generator_forward(z, labels, params))
    assert out.shape == (batch, 3, 32, 32), out.shape

    # Kernel vs same-precision reference (bf16 operands, f32 accumulation).
    ref_bf16 = generator_reference_bf16(z, labels, params)
    assert jnp.allclose(out, ref_bf16, atol=5e-3, rtol=0), \
        float(jnp.max(jnp.abs(out - ref_bf16)))

    # Sanity check vs the original f32 semantics (sigmoid outputs in [0, 1]).
    ref_f32 = generator_reference_f32(z, labels, params)
    assert jnp.allclose(out, ref_f32, atol=5e-2, rtol=0), \
        float(jnp.max(jnp.abs(out - ref_f32)))

    print("KERNEL_OK")
</pallas_src>

<mosaic_0001>
module attributes {stable_mosaic.version = 11 : i64} {
  func.func @trunk_kernel(%arg0: memref<8x32xbf16, #tpu.memory_space<vmem>>, %arg1: memref<8x10xbf16, #tpu.memory_space<vmem>>, %arg2: memref<32x128xbf16, #tpu.memory_space<vmem>>, %arg3: memref<10x128xbf16, #tpu.memory_space<vmem>>, %arg4: memref<1x128xf32, #tpu.memory_space<vmem>>, %arg5: memref<128x256xbf16, #tpu.memory_space<vmem>>, %arg6: memref<1x256xf32, #tpu.memory_space<vmem>>, %arg7: memref<256x512xbf16, #tpu.memory_space<vmem>>, %arg8: memref<1x512xf32, #tpu.memory_space<vmem>>, %arg9: memref<512x1024xbf16, #tpu.memory_space<vmem>>, %arg10: memref<1x1024xf32, #tpu.memory_space<vmem>>, %arg11: memref<8x1024xbf16, #tpu.memory_space<vmem>>) attributes {dimension_semantics = [], scalar_prefetch = 0 : i64, scratch_operands = 0 : i64, tpu.core_type = #tpu.core_type<tc>} {
    %c0 = arith.constant 0 : index
    %c0_0 = arith.constant 0 : index
    %0 = vector.load %arg0[%c0, %c0_0] : memref<8x32xbf16, #tpu.memory_space<vmem>>, vector<8x32xbf16>
    %c0_1 = arith.constant 0 : index
    %c0_2 = arith.constant 0 : index
    %1 = vector.load %arg2[%c0_1, %c0_2] : memref<32x128xbf16, #tpu.memory_space<vmem>>, vector<32x128xbf16>
    %cst = arith.constant dense<0.000000e+00> : vector<8x128xf32>
    %2 = tpu.matmul %0, %1, %cst {dimension_numbers = #tpu.dot_dimension_numbers<[1], [0], [0], [1], [0, 0, 1, 1], [], []>} : vector<8x32xbf16>, vector<32x128xbf16>, vector<8x128xf32> -> vector<8x128xf32>
    %c0_3 = arith.constant 0 : index
    %c0_4 = arith.constant 0 : index
    %3 = vector.load %arg1[%c0_3, %c0_4] : memref<8x10xbf16, #tpu.memory_space<vmem>>, vector<8x10xbf16>
    %c0_5 = arith.constant 0 : index
    %c0_6 = arith.constant 0 : index
    %4 = vector.load %arg3[%c0_5, %c0_6] : memref<10x128xbf16, #tpu.memory_space<vmem>>, vector<10x128xbf16>
    %cst_7 = arith.constant dense<0.000000e+00> : vector<8x128xf32>
    %5 = tpu.matmul %3, %4, %cst_7 {dimension_numbers = #tpu.dot_dimension_numbers<[1], [0], [0], [1], [0, 0, 1, 1], [], []>} : vector<8x10xbf16>, vector<10x128xbf16>, vector<8x128xf32> -> vector<8x128xf32>
    %6 = arith.addf %2, %5 : vector<8x128xf32>
    %c0_8 = arith.constant 0 : index
    %c0_9 = arith.constant 0 : index
    %7 = vector.load %arg4[%c0_8, %c0_9] : memref<1x128xf32, #tpu.memory_space<vmem>>, vector<1x128xf32>
    %8 = vector.broadcast %7 : vector<1x128xf32> to vector<8x128xf32>
    %9 = arith.addf %6, %8 : vector<8x128xf32>
    %cst_10 = arith.constant 0.000000e+00 : f32
    %10 = vector.broadcast %cst_10 : f32 to vector<8x128xf32>
    %11 = arith.maximumf %9, %10 : vector<8x128xf32>
    %12 = arith.truncf %11 : vector<8x128xf32> to vector<8x128xbf16>
    %c0_11 = arith.constant 0 : index
    %c0_12 = arith.constant 0 : index
    %13 = vector.load %arg5[%c0_11, %c0_12] : memref<128x256xbf16, #tpu.memory_space<vmem>>, vector<128x256xbf16>
    %cst_13 = arith.constant dense<0.000000e+00> : vector<8x256xf32>
    %14 = tpu.matmul %12, %13, %cst_13 {dimension_numbers = #tpu.dot_dimension_numbers<[1], [0], [0], [1], [0, 0, 1, 1], [], []>} : vector<8x128xbf16>, vector<128x256xbf16>, vector<8x256xf32> -> vector<8x256xf32>
    %c0_14 = arith.constant 0 : index
    %c0_15 = arith.constant 0 : index
    %15 = vector.load %arg6[%c0_14, %c0_15] : memref<1x256xf32, #tpu.memory_space<vmem>>, vector<1x256xf32>
    %16 = vector.broadcast %15 : vector<1x256xf32> to vector<8x256xf32>
    %17 = arith.addf %14, %16 : vector<8x256xf32>
    %cst_16 = arith.constant 0.000000e+00 : f32
    %18 = vector.broadcast %cst_16 : f32 to vector<8x256xf32>
    %19 = arith.maximumf %17, %18 : vector<8x256xf32>
    %20 = arith.truncf %19 : vector<8x256xf32> to vector<8x256xbf16>
    %c0_17 = arith.constant 0 : index
    %c0_18 = arith.constant 0 : index
    %21 = vector.load %arg7[%c0_17, %c0_18] : memref<256x512xbf16, #tpu.memory_space<vmem>>, vector<256x512xbf16>
    %cst_19 = arith.constant dense<0.000000e+00> : vector<8x512xf32>
    %22 = tpu.matmul %20, %21, %cst_19 {dimension_numbers = #tpu.dot_dimension_numbers<[1], [0], [0], [1], [0, 0, 1, 1], [], []>} : vector<8x256xbf16>, vector<256x512xbf16>, vector<8x512xf32> -> vector<8x512xf32>
    %c0_20 = arith.constant 0 : index
    %c0_21 = arith.constant 0 : index
    %23 = vector.load %arg8[%c0_20, %c0_21] : memref<1x512xf32, #tpu.memory_space<vmem>>, vector<1x512xf32>
    %24 = vector.broadcast %23 : vector<1x512xf32> to vector<8x512xf32>
    %25 = arith.addf %22, %24 : vector<8x512xf32>
    %cst_22 = arith.constant 0.000000e+00 : f32
    %26 = vector.broadcast %cst_22 : f32 to vector<8x512xf32>
    %27 = arith.maximumf %25, %26 : vector<8x512xf32>
    %28 = arith.truncf %27 : vector<8x512xf32> to vector<8x512xbf16>
    %c0_23 = arith.constant 0 : index
    %c0_24 = arith.constant 0 : index
    %29 = vector.load %arg9[%c0_23, %c0_24] : memref<512x1024xbf16, #tpu.memory_space<vmem>>, vector<512x1024xbf16>
    %cst_25 = arith.constant dense<0.000000e+00> : vector<8x1024xf32>
    %30 = tpu.matmul %28, %29, %cst_25 {dimension_numbers = #tpu.dot_dimension_numbers<[1], [0], [0], [1], [0, 0, 1, 1], [], []>} : vector<8x512xbf16>, vector<512x1024xbf16>, vector<8x1024xf32> -> vector<8x1024xf32>
    %c0_26 = arith.constant 0 : index
    %c0_27 = arith.constant 0 : index
    %31 = vector.load %arg10[%c0_26, %c0_27] : memref<1x1024xf32, #tpu.memory_space<vmem>>, vector<1x1024xf32>
    %32 = vector.broadcast %31 : vector<1x1024xf32> to vector<8x1024xf32>
    %33 = arith.addf %30, %32 : vector<8x1024xf32>
    %cst_28 = arith.constant 0.000000e+00 : f32
    %34 = vector.broadcast %cst_28 : f32 to vector<8x1024xf32>
    %35 = arith.maximumf %33, %34 : vector<8x1024xf32>
    %36 = arith.truncf %35 : vector<8x1024xf32> to vector<8x1024xbf16>
    %c0_29 = arith.constant 0 : index
    %c0_30 = arith.constant 0 : index
    %37 = vector.load %arg11[%c0_29, %c0_30] : memref<8x1024xbf16, #tpu.memory_space<vmem>>, vector<8x1024xbf16>
    tpu.vector_store %arg11[%c0_29, %c0_30], %36 {strides = array<i32>} : memref<8x1024xbf16, #tpu.memory_space<vmem>>, vector<8x1024xbf16>,
    return
  }
}

</mosaic_0001>

<bundles_post_ra>
// kernel: tpu_custom_call.1
= control target key start
LH: loop header
LB: loop body
LE: loop exit
PB: predicated region body
PF: predicated region fallthrough
CT: control target
= control target key end

     0   :  { %16 = vsyncpa [#allocation3], 0  ;;  %s3844_s0 = inlined_call_operand.hbm [shape: bf16[8,32], index: 0, kind: input, shape index: {}]   ;;  %s3845_s1 = inlined_call_operand.hbm [shape: bf16[8,10], index: 1, kind: input, shape index: {}]   ;;  %s3846_s2 = inlined_call_operand.hbm [shape: bf16[32,128], index: 2, kind: input, shape index: {}]   ;;  %s3847_s3 = inlined_call_operand.vmem [shape: bf16[10,128], index: 3, kind: input, shape index: {}]   ;;  %s3848_s4 = inlined_call_operand.hbm [shape: f32[1,128], index: 4, kind: input, shape index: {}]   ;;  %s3849_s5 = inlined_call_operand.hbm [shape: bf16[128,256], index: 5, kind: input, shape index: {}]   ;;  %s3850_s6 = inlined_call_operand.vmem [shape: f32[1,256], index: 6, kind: input, shape index: {}]   ;;  %s3851_s7 = inlined_call_operand.hbm [shape: bf16[256,512], index: 7, kind: input, shape index: {}]   ;;  %s3852_s8 = inlined_call_operand.vmem [shape: f32[1,512], index: 8, kind: input, shape index: {}]   ;;  %s3853_s9 = inlined_call_operand.hbm [shape: bf16[512,1024], index: 9, kind: input, shape index: {}]   ;;  %s3854_s10 = inlined_call_operand.vmem [shape: f32[1,1024], index: 10, kind: input, shape index: {}]   ;;  %s3855_s11 = inlined_call_operand.hbm [shape: bf16[8,1024], index: 11, kind: output, shape index: {}]  }
   0x1   :  { %17 = vsyncpa [#allocation6], 0 }
   0x2   :  { %18 = vsyncpa [#allocation9], 0 }
   0x3   :  { %19 = vsyncpa [#allocation12], 0 }
   0x4   :  { %20 = vsyncpa [#allocation4], 0  ;;  %s3594_s17 = smov [#allocation5]   ;;  %s3595_s19 = smov [#allocation8]  }
   0x5   :  { %s37_s18 = sshll.u32 %s3594_s17, 4  ;;  %s61_s20 = sshll.u32 %s3595_s19, 4  ;;  %s38_s18 = int_to_ptr.vmem [resolvable:$true] %s37_s18  ;;  %s62_s20 = int_to_ptr.vmem [resolvable:$true] %s61_s20 }
   0x6   :  { %s3408_s23 = scalar_lea.hbm %s3845_s1, 64 }
   0x7   :  { %p3409_p0 = scmp.ne.s32.totalorder %s3845_s1, %s3408_s23  ;;  %p3412_p1 = scmp.lt.u32.totalorder %s3408_s23, %s3845_s1 }
   0x9   :  { %p3414_p2 = pnand %p3412_p1, %p3409_p0 }
   0xb   :  { %3417 = shalt.err (!%p3414_p2)
}
   0xc   :  { %s3418_s28 = scalar_lea.vmem %s38_s18, 64  ;;  %p3423_p4 = scmp.lt.s32.totalorder %s38_s18, %s38_s18 }
   0xd   :  { %p3419_p3 = scmp.ne.s32.totalorder %s38_s18, %s3418_s28  ;;  %p3424_p5 = scmp.lt.s32.totalorder %s3418_s28, %s3418_s28 }
   0xf   :  { %p3425_p6 = por %p3424_p5, %p3423_p4 }
  0x11   :  { %p3426_p7 = pnand %p3425_p6, %p3419_p3 }
  0x13   :  { %3429 = shalt.err (!%p3426_p7)
}
  0x14   :  { %40 = dma.hbm_to_vmem [thread:$0]  %s3845_s1, 64, %s38_s18, [#allocation6]  }
  0x15   :  { %s3430_s14 = scalar_lea.hbm %s3848_s4, 16 }
  0x16   :  { %p3431_p8 = scmp.ne.s32.totalorder %s3848_s4, %s3430_s14  ;;  %p3434_p9 = scmp.lt.u32.totalorder %s3430_s14, %s3848_s4 }
  0x18   :  { %p3436_p10 = pnand %p3434_p9, %p3431_p8 }
  0x1a   :  { %3439 = shalt.err (!%p3436_p10)
}
  0x1b   :  { %s3440_s21 = scalar_lea.vmem %s62_s20, 16  ;;  %s3444_s22 = scalar_lea.vmem %s62_s20, 32 }
  0x1c   :  { %p3441_p11 = scmp.ne.s32.totalorder %s62_s20, %s3440_s21  ;;  %p3445_p12 = scmp.lt.s32.totalorder %s62_s20, %s62_s20 }
  0x1d   :  { %p3446_p13 = scmp.lt.s32.totalorder %s3444_s22, %s3440_s21 }
  0x1f   :  { %p3447_p0 = por %p3446_p13, %p3445_p12 }
  0x21   :  { %p3448_p1 = pnand %p3447_p0, %p3441_p11 }
  0x23   :  { %3451 = shalt.err (!%p3448_p1)
}
  0x24   :  { %64 = dma.hbm_to_vmem [thread:$0]  %s3848_s4, 16, %s62_s20, [#allocation9]  }
  0x25   :  { %s3596_s23 = smov [#allocation11]   ;;  %s3452_s27 = scalar_lea.hbm %s3851_s7, 8192 }
  0x26   :  { %s84_s24 = sshll.u32 %s3596_s23, 4  ;;  %p3453_p2 = scmp.ne.s32.totalorder %s3851_s7, %s3452_s27  ;;  %s85_s24 = int_to_ptr.vmem [resolvable:$true] %s84_s24 }
  0x27   :  { %p3456_p3 = scmp.lt.u32.totalorder %s3452_s27, %s3851_s7 }
  0x29   :  { %p3458_p4 = pnand %p3456_p3, %p3453_p2 }
  0x2b   :  { %3461 = shalt.err (!%p3458_p4)
}
  0x2c   :  { %s3462_s13 = scalar_lea.vmem %s85_s24, 8192  ;;  %p3467_p6 = scmp.lt.s32.totalorder %s85_s24, %s85_s24 }
  0x2d   :  { %p3463_p5 = scmp.ne.s32.totalorder %s85_s24, %s3462_s13  ;;  %p3468_p7 = scmp.lt.s32.totalorder %s3462_s13, %s3462_s13 }
  0x2f   :  { %p3469_p8 = por %p3468_p7, %p3467_p6 }
  0x31   :  { %p3470_p9 = pnand %p3469_p8, %p3463_p5 }
  0x33   :  { %3473 = shalt.err (!%p3470_p9)
}
  0x34   :  { %s3597_s4 = smov 256   ;;  %s3598_s20 = smov 16  }
  0x35   :  { %90 = dma.hbm_to_vmem [thread:$0]  %s3851_s7, 8192, %s85_s24, [#allocation12], %s3597_s4, %s3597_s4, %s3598_s20  }
  0x36   :  { %s3599_s16 = smov [#allocation2]   ;;  %s3600_s19 = smov [#allocation7]  }
  0x37   :  { %s27_s17 = sshll.u32 %s3599_s16, 4  ;;  %s46_s21 = sshll.u32 %s3600_s19, 4  ;;  %s28_s17 = int_to_ptr.vmem [resolvable:$true] %s27_s17  ;;  %s47_s21 = int_to_ptr.vmem [resolvable:$true] %s46_s21 }
  0x38   :  { %s3474_s18 = scalar_lea.hbm %s3844_s0, 64 }
  0x39   :  { %p3475_p10 = scmp.ne.s32.totalorder %s3844_s0, %s3474_s18  ;;  %p3478_p11 = scmp.lt.u32.totalorder %s3474_s18, %s3844_s0 }
  0x3b   :  { %p3480_p12 = pnand %p3478_p11, %p3475_p10 }
  0x3d   :  { %3483 = shalt.err (!%p3480_p12)
}
  0x3e   :  { %s3484_s7 = scalar_lea.vmem %s28_s17, 64  ;;  %p3489_p0 = scmp.lt.s32.totalorder %s28_s17, %s28_s17 }
  0x3f   :  { %p3485_p13 = scmp.ne.s32.totalorder %s28_s17, %s3484_s7  ;;  %p3490_p1 = scmp.lt.s32.totalorder %s3484_s7, %s3484_s7 }
  0x41   :  { %p3491_p2 = por %p3490_p1, %p3489_p0 }
  0x43   :  { %p3492_p3 = pnand %p3491_p2, %p3485_p13 }
  0x45   :  { %3495 = shalt.err (!%p3492_p3)
}
  0x46   :  { %30 = dma.hbm_to_vmem [thread:$0]  %s3844_s0, 64, %s28_s17, [#allocation3]  }
  0x47   :  { %s3496_s12 = scalar_lea.hbm %s3846_s2, 256 }
  0x48   :  { %p3497_p4 = scmp.ne.s32.totalorder %s3846_s2, %s3496_s12  ;;  %p3500_p5 = scmp.lt.u32.totalorder %s3496_s12, %s3846_s2 }
  0x4a   :  { %p3502_p6 = pnand %p3500_p5, %p3497_p4 }
  0x4c   :  { %3505 = shalt.err (!%p3502_p6)
}
  0x4d   :  { %s3506_s15 = scalar_lea.vmem %s47_s21, 256  ;;  %p3511_p8 = scmp.lt.s32.totalorder %s47_s21, %s47_s21 }
  0x4e   :  { %p3507_p7 = scmp.ne.s32.totalorder %s47_s21, %s3506_s15  ;;  %p3512_p9 = scmp.lt.s32.totalorder %s3506_s15, %s3506_s15 }
  0x50   :  { %p3513_p10 = por %p3512_p9, %p3511_p8 }
  0x52   :  { %p3514_p11 = pnand %p3513_p10, %p3507_p7 }
  0x54   :  { %3517 = shalt.err (!%p3514_p11)
}
  0x55   :  { %s3601_s0 = smov 64   ;;  %s3602_s16 = smov 4  }
  0x56   :  { %52 = dma.hbm_to_vmem [thread:$0]  %s3846_s2, 256, %s47_s21, [#allocation6], %s3601_s0, %s3601_s0, %s3602_s16  }
  0x57   :  { %s3603_s22 = smov [#allocation10]   ;;  %s3518_s25 = scalar_lea.hbm %s3849_s5, 2048 }
  0x58   :  { %s70_s1 = sshll.u32 %s3603_s22, 4  ;;  %p3519_p12 = scmp.ne.s32.totalorder %s3849_s5, %s3518_s25  ;;  %s71_s1 = int_to_ptr.vmem [resolvable:$true] %s70_s1 }
  0x59   :  { %p3522_p13 = scmp.lt.u32.totalorder %s3518_s25, %s3849_s5 }
  0x5b   :  { %p3524_p0 = pnand %p3522_p13, %p3519_p12 }
  0x5d   :  { %3527 = shalt.err (!%p3524_p0)
}
  0x5e   :  { %s3528_s28 = scalar_lea.vmem %s71_s1, 2048  ;;  %p3533_p2 = scmp.lt.s32.totalorder %s71_s1, %s71_s1 }
  0x5f   :  { %p3529_p1 = scmp.ne.s32.totalorder %s71_s1, %s3528_s28  ;;  %p3534_p3 = scmp.lt.s32.totalorder %s3528_s28, %s3528_s28 }
  0x61   :  { %p3535_p4 = por %p3534_p3, %p3533_p2 }
  0x63   :  { %p3536_p5 = pnand %p3535_p4, %p3529_p1 }
  0x65   :  { %3539 = shalt.err (!%p3536_p5)
}
  0x66   :  { %s3604_s2 = smov 128   ;;  %s3605_s21 = smov 8  }
  0x67   :  { %76 = dma.hbm_to_vmem [thread:$0]  %s3849_s5, 2048, %s71_s1, [#allocation9], %s3604_s2, %s3604_s2, %s3605_s21  }
  0x68   :  { %s3606_s12 = smov [#allocation13]   ;;  %s3540_s14 = scalar_lea.hbm %s3853_s9, 32768 }
  0x69   :  { %s98_s13 = sshll.u32 %s3606_s12, 4  ;;  %p3541_p6 = scmp.ne.s32.totalorder %s3853_s9, %s3540_s14  ;;  %s99_s13 = int_to_ptr.vmem [resolvable:$true] %s98_s13 }
  0x6a   :  { %p3544_p7 = scmp.lt.u32.totalorder %s3540_s14, %s3853_s9 }
  0x6c   :  { %p3546_p8 = pnand %p3544_p7, %p3541_p6 }
  0x6e   :  { %3549 = shalt.err (!%p3546_p8)
}
  0x6f   :  { %s3550_s19 = scalar_lea.vmem %s99_s13, 32768  ;;  %p3555_p10 = scmp.lt.s32.totalorder %s99_s13, %s99_s13 }
  0x70   :  { %p3551_p9 = scmp.ne.s32.totalorder %s99_s13, %s3550_s19  ;;  %p3556_p11 = scmp.lt.s32.totalorder %s3550_s19, %s3550_s19 }
  0x72   :  { %p3557_p12 = por %p3556_p11, %p3555_p10 }
  0x74   :  { %p3558_p13 = pnand %p3557_p12, %p3551_p9 }
  0x76   :  { %3561 = shalt.err (!%p3558_p13)
}
  0x77   :  { %s3607_s5 = smov 512   ;;  %s3608_s22 = smov 32  }
  0x78   :  { %104 = dma.hbm_to_vmem [thread:$0]  %s3853_s9, 32768, %s99_s13, [#allocation12], %s3607_s5, %s3607_s5, %s3608_s22  }
  0x79   :  { %3584 = dma.done.wait [#allocation3], 64  }
  0x7a   :  { %3585 = vsyncadd [#allocation3], 4294967232 }
  0x7b   :  { %3586 = dma.done.wait [#allocation6], 320  }
  0x7c   :  { %3587 = vsyncadd [#allocation6], 4294966976 }
  0x7d   :  { %3588 = dma.done.wait [#allocation9], 2064  }
  0x7e   :  { %3589 = vsyncadd [#allocation9], 4294965232 }
  0x7f   :  { %3590 = dma.done.wait [#allocation12], 40960  }
  0x80   :  { %3591 = vsyncadd [#allocation12], 4294926336  ;;  %v3609_v0 = vmov 0.0   ;;  %vm3610_vm0 = vmmov 0   ;;  %vm146_vm1 = vcmask 1044480   ;;  %vm142_vm2 = vcmask 80896  }
  0x81   :  { %3228 = vmatprep.subr.bf16.mxu1 %v3609_v0  ;;  %3230 = vmatprep.mubr.msk.bf16.mxu1 %vm3610_vm0, %v3609_v0  ;;  %v3285_v1 = vld [vmem:[%s3847_s3] sm:$0x1f]   ;;  %v134_v3 = vld [vmem:[#allocation5] sm:$0xf]  ;;  %v3286_v4 = vld [vmem:[#allocation7] sm:$0xff]   ;;  %vm202_vm3 = vcmask 261120  }
  0x82   :  { %v148_v2 = vsel %vm146_vm1, %v3285_v1, 0  ;;  %v3288_v5 = vld [vmem:[#allocation10 + $0x4] ss:$8 sps:$4 sm:$0xff]   ;;  %v3290_v6 = vld [vmem:[#allocation10] ss:$8 sps:$4 sm:$0xff]   ;;  %v3287_v8 = vld [vmem:[#allocation7 + $0x8] sm:$0xff]  }
  0x83   :  { %3229 = vmatpush3.bf16.msra.mxu1 %v148_v2  ;;  %v3291_v7 = vld [vmem:[#allocation10 + $0x14] ss:$8 sps:$4 sm:$0xff]   ;;  %364 = vmatprep.subr.bf16.mxu0 %v3288_v5  ;;  %v3293_v9 = vld [vmem:[#allocation10 + $0x10] ss:$8 sps:$4 sm:$0xff]   ;;  %v3294_v10 = vld [vmem:[#allocation10 + $0x24] ss:$8 sps:$4 sm:$0xff]  }
  0x84   :  { %3234 = vmatprep.subr.bf16.mxu1 %v3609_v0  ;;  %365 = vmatpush1.bf16.msra.mxu0 %v3290_v6  ;;  %v129_v11 = vld [vmem:[#allocation2] sm:$0xf]  ;;  %v3297_v13 = vld [vmem:[#allocation10 + $0x34] ss:$8 sps:$4 sm:$0xff]   ;;  %v3299_v14 = vld [vmem:[#allocation10 + $0x30] ss:$8 sps:$4 sm:$0xff]  }
  0x85   :  { %366 = vmatprep.subr.bf16.mxu0 %v3291_v7  ;;  %v3296_v12 = vld [vmem:[#allocation10 + $0x20] ss:$8 sps:$4 sm:$0xff]   ;;  %v3300_v15 = vld [vmem:[#allocation10 + $0x44] ss:$8 sps:$4 sm:$0xff]   ;;  %v3303_v17 = vld [vmem:[#allocation10 + $0x54] ss:$8 sps:$4 sm:$0xff]  }
  0x86   :  { %3231 = vmatmul.mubr.msk.bf16.vlgmr.msra.gmra.mrb[0].mxu1 %vm142_vm2, %v134_v3  ;;  %v3302_v16 = vld [vmem:[#allocation10 + $0x40] ss:$8 sps:$4 sm:$0xff]   ;;  %v3305_v18 = vld [vmem:[#allocation10 + $0x50] ss:$8 sps:$4 sm:$0xff]   ;;  %v3306_v19 = vld [vmem:[#allocation10 + $0x64] ss:$8 sps:$4 sm:$0xff]  }
  0x87   :  { %3235 = vmatpush3.bf16.msra.mxu1 %v3286_v4  ;;  %3238 = vmatprep.mubr.msk.bf16.mxu1 %vm3610_vm0, %v3609_v0  ;;  %v3308_v20 = vld [vmem:[#allocation10 + $0x60] ss:$8 sps:$4 sm:$0xff]   ;;  %v3309_v21 = vld [vmem:[#allocation10 + $0x74] ss:$8 sps:$4 sm:$0xff]   ;;  %v3311_v22 = vld [vmem:[#allocation10 + $0x70] ss:$8 sps:$4 sm:$0xff]  }
  0x88   :  { %3236 = vmatprep.subr.bf16.mxu1 %v3609_v0  ;;  %367 = vmatpush1.bf16.msra.mxu0 %v3293_v9  ;;  %v3611_v23 = vmov 0   ;;  %v3312_v24 = vld [vmem:[#allocation11] ss:$16 sps:$4 sm:$0xff]   ;;  %v3314_v25 = vld [vmem:[#allocation11 + $0x4] ss:$16 sps:$4 sm:$0xff]  }
  0x89   :  { %368 = vmatprep.subr.bf16.mxu0 %v3294_v10  ;;  %396 = vmatprep.mubr.bf16.mxu0 %v3611_v23  ;;  %v3317_v26 = vld [vmem:[#allocation11 + $0xc] ss:$16 sps:$4 sm:$0xff]   ;;  %v3320_v27 = vld [vmem:[#allocation11 + $0x24] ss:$16 sps:$4 sm:$0xff]   ;;  %v3318_v28 = vld [vmem:[#allocation11 + $0x20] ss:$16 sps:$4 sm:$0xff]  }
  0x8a   :  { %v3326_v29 = vld [vmem:[#allocation11 + $0x44] ss:$16 sps:$4 sm:$0xff]   ;;  %v3324_v30 = vld [vmem:[#allocation11 + $0x40] ss:$16 sps:$4 sm:$0xff]   ;;  %v2878_v58 = vld [vmem:[#allocation8] ss:$0 sm:$0xff] }
  0x8b   :  { %3237 = vmatpush3.bf16.msra.mxu1 %v3287_v8  ;;  %v3332_v31 = vld [vmem:[#allocation11 + $0x64] ss:$16 sps:$4 sm:$0xff]   ;;  %v3330_v32 = vld [vmem:[#allocation11 + $0x60] ss:$16 sps:$4 sm:$0xff]   ;;  %v3315_v1 = vld [vmem:[#allocation11 + $0x8] ss:$16 sps:$4 sm:$0xff]  }
  0x8c   :  { %369 = vmatpush1.bf16.msra.mxu0 %v3296_v12  ;;  %815 = vmatprep.subr.bf16.mxu1 %v3314_v25  ;;  %v3338_v33 = vld [vmem:[#allocation11 + $0x84] ss:$16 sps:$4 sm:$0xff]   ;;  %v3336_v34 = vld [vmem:[#allocation11 + $0x80] ss:$16 sps:$4 sm:$0xff]   ;;  %v3323_v3 = vld [vmem:[#allocation11 + $0x2c] ss:$16 sps:$4 sm:$0xff]  }
  0x8d   :  { %370 = vmatprep.subr.bf16.mxu0 %v3297_v13  ;;  %v3344_v35 = vld [vmem:[#allocation11 + $0xa4] ss:$16 sps:$4 sm:$0xff]   ;;  %v3342_v36 = vld [vmem:[#allocation11 + $0xa0] ss:$16 sps:$4 sm:$0xff]   ;;  %v3321_v4 = vld [vmem:[#allocation11 + $0x28] ss:$16 sps:$4 sm:$0xff]  }
  0x8e   :  { %3239 = vmatmul.mubr.msk.bf16.vlgmr.msra.gmra.mrb[4].mxu1 %vm202_vm3, %v129_v11  ;;  %v3350_v37 = vld [vmem:[#allocation11 + $0xc4] ss:$16 sps:$4 sm:$0xff]   ;;  %v3348_v38 = vld [vmem:[#allocation11 + $0xc0] ss:$16 sps:$4 sm:$0xff]   ;;  %v3329_v5 = vld [vmem:[#allocation11 + $0x4c] ss:$16 sps:$4 sm:$0xff]  }
  0x8f   :  { %816 = vmatpush1.bf16.msra.mxu1 %v3312_v24  ;;  %v3356_v39 = vld [vmem:[#allocation11 + $0xe4] ss:$16 sps:$4 sm:$0xff]   ;;  %v3354_v40 = vld [vmem:[#allocation11 + $0xe0] ss:$16 sps:$4 sm:$0xff]   ;;  %v3327_v6 = vld [vmem:[#allocation11 + $0x48] ss:$16 sps:$4 sm:$0xff]  }
  0x90   :  { %371 = vmatpush1.bf16.msra.mxu0 %v3299_v14  ;;  %817 = vmatprep.subr.bf16.mxu1 %v3320_v27  ;;  %v3362_v41 = vld [vmem:[#allocation11 + $0x104] ss:$16 sps:$4 sm:$0xff]   ;;  %v3360_v42 = vld [vmem:[#allocation11 + $0x100] ss:$16 sps:$4 sm:$0xff]   ;;  %v3335_v7 = vld [vmem:[#allocation11 + $0x6c] ss:$16 sps:$4 sm:$0xff]  }
  0x91   :  { %372 = vmatprep.subr.bf16.mxu0 %v3300_v15  ;;  %v3368_v43 = vld [vmem:[#allocation11 + $0x124] ss:$16 sps:$4 sm:$0xff]   ;;  %v3366_v44 = vld [vmem:[#allocation11 + $0x120] ss:$16 sps:$4 sm:$0xff]   ;;  %v3333_v8 = vld [vmem:[#allocation11 + $0x68] ss:$16 sps:$4 sm:$0xff]  }
  0x92   :  { %v3374_v45 = vld [vmem:[#allocation11 + $0x144] ss:$16 sps:$4 sm:$0xff]   ;;  %v3372_v46 = vld [vmem:[#allocation11 + $0x140] ss:$16 sps:$4 sm:$0xff]   ;;  %v3341_v9 = vld [vmem:[#allocation11 + $0x8c] ss:$16 sps:$4 sm:$0xff]  }
  0x93   :  { %818 = vmatpush1.bf16.msra.mxu1 %v3318_v28  ;;  %v3380_v47 = vld [vmem:[#allocation11 + $0x164] ss:$16 sps:$4 sm:$0xff]   ;;  %v3378_v48 = vld [vmem:[#allocation11 + $0x160] ss:$16 sps:$4 sm:$0xff]   ;;  %v3339_v10 = vld [vmem:[#allocation11 + $0x88] ss:$16 sps:$4 sm:$0xff]  }
  0x94   :  { %373 = vmatpush1.bf16.msra.mxu0 %v3302_v16  ;;  %819 = vmatprep.subr.bf16.mxu1 %v3326_v29  ;;  %v3386_v49 = vld [vmem:[#allocation11 + $0x184] ss:$16 sps:$4 sm:$0xff]   ;;  %v3384_v50 = vld [vmem:[#allocation11 + $0x180] ss:$16 sps:$4 sm:$0xff]   ;;  %v3347_v11 = vld [vmem:[#allocation11 + $0xac] ss:$16 sps:$4 sm:$0xff]  }
  0x95   :  { %374 = vmatprep.subr.bf16.mxu0 %v3303_v17  ;;  %v3392_v51 = vld [vmem:[#allocation11 + $0x1a4] ss:$16 sps:$4 sm:$0xff]   ;;  %v3390_v52 = vld [vmem:[#allocation11 + $0x1a0] ss:$16 sps:$4 sm:$0xff]   ;;  %v3345_v12 = vld [vmem:[#allocation11 + $0xa8] ss:$16 sps:$4 sm:$0xff]  }
  0x96   :  { %v3353_v13 = vld [vmem:[#allocation11 + $0xcc] ss:$16 sps:$4 sm:$0xff]   ;;  %v3351_v14 = vld [vmem:[#allocation11 + $0xc8] ss:$16 sps:$4 sm:$0xff]   ;;  %v3398_v29 = vld [vmem:[#allocation11 + $0x1c4] ss:$16 sps:$4 sm:$0xff]  }
  0x97   :  { %820 = vmatpush1.bf16.msra.mxu1 %v3324_v30  ;;  %v3359_v15 = vld [vmem:[#allocation11 + $0xec] ss:$16 sps:$4 sm:$0xff]   ;;  %v3357_v16 = vld [vmem:[#allocation11 + $0xe8] ss:$16 sps:$4 sm:$0xff]  }
  0x98   :  { %375 = vmatpush1.bf16.msra.mxu0 %v3305_v18  ;;  %821 = vmatprep.subr.bf16.mxu1 %v3332_v31  ;;  %v3365_v17 = vld [vmem:[#allocation11 + $0x10c] ss:$16 sps:$4 sm:$0xff]   ;;  %v3363_v18 = vld [vmem:[#allocation11 + $0x108] ss:$16 sps:$4 sm:$0xff]   ;;  %v3396_v31 = vld [vmem:[#allocation11 + $0x1c0] ss:$16 sps:$4 sm:$0xff]  }
  0x99   :  { %376 = vmatprep.subr.bf16.mxu0 %v3306_v19  ;;  %v3371_v19 = vld [vmem:[#allocation11 + $0x12c] ss:$16 sps:$4 sm:$0xff]   ;;  %v3381_v24 = vld [vmem:[#allocation11 + $0x168] ss:$16 sps:$4 sm:$0xff]  }
  0x9a   :  { %v3383_v23 = vld [vmem:[#allocation11 + $0x16c] ss:$16 sps:$4 sm:$0xff]   ;;  %v3393_v28 = vld [vmem:[#allocation11 + $0x1a8] ss:$16 sps:$4 sm:$0xff]  }
  0x9b   :  { %822 = vmatpush1.bf16.msra.mxu1 %v3330_v32  ;;  %v3389_v25 = vld [vmem:[#allocation11 + $0x18c] ss:$16 sps:$4 sm:$0xff]   ;;  %v3399_v32 = vld [vmem:[#allocation11 + $0x1c8] ss:$16 sps:$4 sm:$0xff]  }
  0x9c   :  { %377 = vmatpush1.bf16.msra.mxu0 %v3308_v20  ;;  %823 = vmatprep.subr.bf16.mxu1 %v3338_v33  ;;  %v3369_v20 = vld [vmem:[#allocation11 + $0x128] ss:$16 sps:$4 sm:$0xff]   ;;  %v3395_v27 = vld [vmem:[#allocation11 + $0x1ac] ss:$16 sps:$4 sm:$0xff]   ;;  %v3404_v33 = vld [vmem:[#allocation11 + $0x1e4] ss:$16 sps:$4 sm:$0xff]  }
  0x9d   :  { %378 = vmatprep.subr.bf16.mxu0 %v3309_v21  ;;  %v3377_v21 = vld [vmem:[#allocation11 + $0x14c] ss:$16 sps:$4 sm:$0xff]  }
  0x9e   :  { %v3401_v30 = vld [vmem:[#allocation11 + $0x1cc] ss:$16 sps:$4 sm:$0xff]  }
  0x9f   :  { %824 = vmatpush1.bf16.msra.mxu1 %v3336_v34  ;;  %v3407_v34 = vld [vmem:[#allocation11 + $0x1ec] ss:$16 sps:$4 sm:$0xff]  }
  0xa0   :  { %379 = vmatpush1.bf16.msra.mxu0 %v3311_v22  ;;  %825 = vmatprep.subr.bf16.mxu1 %v3344_v35  ;;  %v3375_v22 = vld [vmem:[#allocation11 + $0x148] ss:$16 sps:$4 sm:$0xff]   ;;  %v3402_v35 = vld [vmem:[#allocation11 + $0x1e0] ss:$16 sps:$4 sm:$0xff]  }
  0xa1   :  { %856 = vmatprep.subr.bf16.mxu0 %v3317_v26  ;;  %v3387_v26 = vld [vmem:[#allocation11 + $0x188] ss:$16 sps:$4 sm:$0xff]  }
  0xa3   :  { %826 = vmatpush1.bf16.msra.mxu1 %v3342_v36  ;;  %v3405_v36 = vld [vmem:[#allocation11 + $0x1e8] ss:$16 sps:$4 sm:$0xff]  }
  0xa4   :  { %827 = vmatprep.subr.bf16.mxu1 %v3350_v37  ;;  %v905_v37 = vld [vmem:[#allocation13] sm:$0xff] }
  0xa7   :  { %828 = vmatpush1.bf16.msra.mxu1 %v3348_v38  ;;  %v909_v38 = vld [vmem:[#allocation13 + $0x20] sm:$0xff] }
  0xa8   :  { %829 = vmatprep.subr.bf16.mxu1 %v3356_v39  ;;  %v906_v39 = vld [vmem:[#allocation13 + $0x8] sm:$0xff] }
  0xab   :  { %830 = vmatpush1.bf16.msra.mxu1 %v3354_v40  ;;  %v2959_v40 = vcombine.low %v905_v37, %v909_v38 }
  0xac   :  { %831 = vmatprep.subr.bf16.mxu1 %v3362_v41  ;;  %v2960_v41 = vcombine.high %v905_v37, %v909_v38  ;;  %v957_v37 = vld [vmem:[#allocation13 + $0x1a0] sm:$0xff]  ;;  %v954_v38 = vld [vmem:[#allocation13 + $0x188] sm:$0xff] }
  0xaf   :  { %832 = vmatpush1.bf16.msra.mxu1 %v3360_v42  ;;  %v910_v42 = vld [vmem:[#allocation13 + $0x28] sm:$0xff] }
  0xb0   :  { %833 = vmatprep.subr.bf16.mxu1 %v3368_v43  ;;  %v2961_v43 = vcombine.low %v906_v39, %v910_v42 }
  0xb3   :  { %834 = vmatpush1.bf16.msra.mxu1 %v3366_v44  ;;  %v2962_v44 = vcombine.high %v906_v39, %v910_v42  ;;  %v958_v39 = vld [vmem:[#allocation13 + $0x1a8] sm:$0xff] }
  0xb4   :  { %835 = vmatprep.subr.bf16.mxu1 %v3374_v45  ;;  %v274_v45 = vlaneseq }
  0xb7   :  { %836 = vmatpush1.bf16.msra.mxu1 %v3372_v46  ;;  %v3762_v46 = vshrl.u32 %v274_v45, 7  ;;  %v965_v45 = vld [vmem:[#allocation13 + $0x1e0] sm:$0xff] }
  0xb8   :  { %837 = vmatprep.subr.bf16.mxu1 %v3380_v47 }
  0xb9   :  { %v3765_v47 = vsub.s32 0, %v3762_v46 }
  0xbb   :  { %838 = vmatpush1.bf16.msra.mxu1 %v3378_v48  ;;  %v272_v48 = vld [vmem:[%s3850_s6] sm:$0x3] }
  0xbc   :  { %839 = vmatprep.subr.bf16.mxu1 %v3386_v49  ;;  %v3771_v49 = vsub.s32 1, %v3762_v46 }
  0xbf   :  { %840 = vmatpush1.bf16.msra.mxu1 %v3384_v50  ;;  %v277_v50 = vrot.slane %v272_v48, %v3765_v47 }
  0xc0   :  { %841 = vmatprep.subr.bf16.mxu1 %v3392_v51  ;;  %v281_v51 = vrot.slane %v272_v48, %v3771_v49  ;;  %v962_v48 = vld [vmem:[#allocation13 + $0x1c8] sm:$0xff] }
  0xc3   :  { %842 = vmatpush1.bf16.msra.mxu1 %v3390_v52 }
  0xc4   :  { %843 = vmatprep.subr.bf16.mxu1 %v3398_v29  ;;  %v949_v29 = vld [vmem:[#allocation13 + $0x160] sm:$0xff] }
  0xc7   :  { %844 = vmatpush1.bf16.msra.mxu1 %v3396_v31  ;;  %v950_v31 = vld [vmem:[#allocation13 + $0x168] sm:$0xff] }
  0xc8   :  { %845 = vmatprep.subr.bf16.mxu1 %v3404_v33 }
  0xcb   :  { %846 = vmatpush1.bf16.msra.mxu1 %v3402_v35 }
  0xcc   :  { %2483 = vmatprep.subr.bf16.mxu1 %v2960_v41 }
 0x159   :  { %v184_v53 = vpop.f32.mrb[0].mxu1 }
 0x15a   :  { %v3232_v54 = vpop.f32.mrb[1].mxu1 }
 0x15b   :  { %v187_v55 = vpop.f32.mrb[2].mxu1 }
 0x15c   :  { %v3233_v56 = vpop.f32.mrb[3].mxu1 }
 0x161   :  { %v240_v57 = vpop.f32.mrb[4].mxu1 }
 0x162   :  { %v241_v59 = vadd.f32 %v240_v57, %v184_v53  ;;  %v3240_v60 = vpop.f32.mrb[5].mxu1 }
 0x163   :  { %v243_v61 = vpop.f32.mrb[6].mxu1 }
 0x164   :  { %v253_v62 = vadd.f32 %v2878_v58, %v241_v59  ;;  %v3241_v63 = vpop.f32.mrb[7].mxu1  ;;  %v913_v59 = vld [vmem:[#allocation13 + $0x40] sm:$0xff] }
 0x165   :  { %v917_v61 = vld [vmem:[#allocation13 + $0x60] sm:$0xff]  ;;  %v918_v63 = vld [vmem:[#allocation13 + $0x68] sm:$0xff] }
 0x166   :  { %v254_v0 = vmax.f32 %v253_v62, 0.0  ;;  %v914_v62 = vld [vmem:[#allocation13 + $0x48] sm:$0xff] }
 0x168   :  { %v255_v2 = vpack.c.bf16 %v254_v0, %v254_v0 }
 0x16a   :  { %397 = vmatmul.mubr.bf16.vlgmr.msra.gmra.mrb[0].mxu0 %v255_v2  ;;  %v2968_v2 = vcombine.high %v913_v59, %v917_v61 }
 0x16b   :  { %857 = vmatpush1.bf16.msra.mxu0 %v3315_v1 }
 0x16c   :  { %858 = vmatprep.subr.bf16.mxu0 %v3323_v3  ;;  %v2970_v3 = vcombine.high %v914_v62, %v918_v63 }
 0x16f   :  { %859 = vmatpush1.bf16.msra.mxu0 %v3321_v4  ;;  %v921_v4 = vld [vmem:[#allocation13 + $0x80] sm:$0xff] }
 0x170   :  { %860 = vmatprep.subr.bf16.mxu0 %v3329_v5  ;;  %v925_v5 = vld [vmem:[#allocation13 + $0xa0] sm:$0xff] }
 0x173   :  { %861 = vmatpush1.bf16.msra.mxu0 %v3327_v6  ;;  %v922_v6 = vld [vmem:[#allocation13 + $0x88] sm:$0xff] }
 0x174   :  { %862 = vmatprep.subr.bf16.mxu0 %v3335_v7  ;;  %v926_v7 = vld [vmem:[#allocation13 + $0xa8] sm:$0xff] }
 0x177   :  { %863 = vmatpush1.bf16.msra.mxu0 %v3333_v8  ;;  %v2967_v8 = vcombine.low %v913_v59, %v917_v61 }
 0x178   :  { %864 = vmatprep.subr.bf16.mxu0 %v3341_v9  ;;  %v2969_v9 = vcombine.low %v914_v62, %v918_v63  ;;  %v977_v63 = vld [vmem:[#allocation13 + $0x240] sm:$0xff] }
 0x17b   :  { %865 = vmatpush1.bf16.msra.mxu0 %v3339_v10  ;;  %v2976_v10 = vcombine.high %v921_v4, %v925_v5 }
 0x17c   :  { %866 = vmatprep.subr.bf16.mxu0 %v3347_v11  ;;  %v2978_v11 = vcombine.high %v922_v6, %v926_v7 }
 0x17f   :  { %867 = vmatpush1.bf16.msra.mxu0 %v3345_v12  ;;  %v929_v12 = vld [vmem:[#allocation13 + $0xc0] sm:$0xff] }
 0x180   :  { %868 = vmatprep.subr.bf16.mxu0 %v3353_v13  ;;  %v933_v13 = vld [vmem:[#allocation13 + $0xe0] sm:$0xff] }
 0x183   :  { %869 = vmatpush1.bf16.msra.mxu0 %v3351_v14  ;;  %v930_v14 = vld [vmem:[#allocation13 + $0xc8] sm:$0xff] }
 0x184   :  { %870 = vmatprep.subr.bf16.mxu0 %v3359_v15  ;;  %v934_v15 = vld [vmem:[#allocation13 + $0xe8] sm:$0xff] }
 0x187   :  { %871 = vmatpush1.bf16.msra.mxu0 %v3357_v16  ;;  %v2975_v16 = vcombine.low %v921_v4, %v925_v5 }
 0x188   :  { %872 = vmatprep.subr.bf16.mxu0 %v3365_v17  ;;  %v2977_v17 = vcombine.low %v922_v6, %v926_v7  ;;  %v985_v7 = vld [vmem:[#allocation13 + $0x280] sm:$0xff] }
 0x18b   :  { %873 = vmatpush1.bf16.msra.mxu0 %v3363_v18  ;;  %v2984_v18 = vcombine.high %v929_v12, %v933_v13 }
 0x18c   :  { %874 = vmatprep.subr.bf16.mxu0 %v3371_v19  ;;  %v2986_v19 = vcombine.high %v930_v14, %v934_v15 }
 0x18f   :  { %875 = vmatpush1.bf16.msra.mxu0 %v3369_v20  ;;  %v937_v20 = vld [vmem:[#allocation13 + $0x100] sm:$0xff] }
 0x190   :  { %876 = vmatprep.subr.bf16.mxu0 %v3377_v21  ;;  %v941_v21 = vld [vmem:[#allocation13 + $0x120] sm:$0xff] }
 0x193   :  { %877 = vmatpush1.bf16.msra.mxu0 %v3375_v22  ;;  %v938_v22 = vld [vmem:[#allocation13 + $0x108] sm:$0xff] }
 0x194   :  { %878 = vmatprep.subr.bf16.mxu0 %v3383_v23  ;;  %v942_v23 = vld [vmem:[#allocation13 + $0x128] sm:$0xff] }
 0x195   :  { %v2993_v33 = vcombine.low %v938_v22, %v942_v23 }
 0x197   :  { %879 = vmatpush1.bf16.msra.mxu0 %v3381_v24  ;;  %v2983_v24 = vcombine.low %v929_v12, %v933_v13 }
 0x198   :  { %880 = vmatprep.subr.bf16.mxu0 %v3389_v25  ;;  %v2985_v25 = vcombine.low %v930_v14, %v934_v15  ;;  %v993_v15 = vld [vmem:[#allocation13 + $0x2c0] sm:$0xff] }
 0x19b   :  { %881 = vmatpush1.bf16.msra.mxu0 %v3387_v26  ;;  %v2992_v26 = vcombine.high %v937_v20, %v941_v21 }
 0x19c   :  { %882 = vmatprep.subr.bf16.mxu0 %v3395_v27  ;;  %v2994_v27 = vcombine.high %v938_v22, %v942_v23  ;;  %v1001_v23 = vld [vmem:[#allocation13 + $0x300] sm:$0xff] }
 0x19f   :  { %883 = vmatpush1.bf16.msra.mxu0 %v3393_v28  ;;  %v945_v28 = vld [vmem:[#allocation13 + $0x140] sm:$0xff] }
 0x1a0   :  { %884 = vmatprep.subr.bf16.mxu0 %v3401_v30  ;;  %v946_v30 = vld [vmem:[#allocation13 + $0x148] sm:$0xff] }
 0x1a1   :  { %v3002_v35 = vcombine.high %v946_v30, %v950_v31  ;;  %v3001_v41 = vcombine.low %v946_v30, %v950_v31  ;;  %v1009_v31 = vld [vmem:[#allocation13 + $0x340] sm:$0xff] }
 0x1a3   :  { %885 = vmatpush1.bf16.msra.mxu0 %v3399_v32  ;;  %v2991_v32 = vcombine.low %v937_v20, %v941_v21 }
 0x1a4   :  { %886 = vmatprep.subr.bf16.mxu0 %v3407_v34  ;;  %v3000_v34 = vcombine.high %v945_v28, %v949_v29 }
 0x1a7   :  { %887 = vmatpush1.bf16.msra.mxu0 %v3405_v36  ;;  %v953_v36 = vld [vmem:[#allocation13 + $0x180] sm:$0xff] }
 0x1a8   :  { %2565 = vmatprep.subr.bf16.mxu0 %v2962_v44  ;;  %v3008_v42 = vcombine.high %v953_v36, %v957_v37  ;;  %v961_v44 = vld [vmem:[#allocation13 + $0x1c0] sm:$0xff] }
 0x1a9   :  { %v3015_v59 = vcombine.low %v961_v44, %v965_v45 }
 0x23d   :  { %v398_v52 = vpop.f32.mrb[0].mxu0 }
 0x23e   :  { %v399_v53 = vadd.f32 %v398_v52, %v277_v50  ;;  %v400_v54 = vpop.f32.mrb[1].mxu0  ;;  %v966_v50 = vld [vmem:[#allocation13 + $0x1e8] sm:$0xff]  ;;  %v3009_v52 = vcombine.low %v954_v38, %v958_v39 }
 0x23f   :  { %v401_v55 = vadd.f32 %v400_v54, %v281_v51  ;;  %v402_v56 = vpop.f32.mrb[2].mxu0  ;;  %v3007_v51 = vcombine.low %v953_v36, %v957_v37  ;;  %v3018_v54 = vcombine.high %v962_v48, %v966_v50 }
 0x240   :  { %v405_v57 = vmax.f32 %v399_v53, 0.0  ;;  %v403_v58 = vpop.f32.mrb[3].mxu0  ;;  %v3016_v53 = vcombine.high %v961_v44, %v965_v45  ;;  %v973_v56 = vld [vmem:[#allocation13 + $0x220] sm:$0xff]  ;;  %v1022_v45 = vld [vmem:[#allocation13 + $0x3a8] sm:$0xff] }
 0x241   :  { %v406_v60 = vmax.f32 %v401_v55, 0.0  ;;  %v969_v55 = vld [vmem:[#allocation13 + $0x200] sm:$0xff]  ;;  %v974_v58 = vld [vmem:[#allocation13 + $0x228] sm:$0xff] }
 0x242   :  { %v407_v1 = vpack.c.bf16 %v405_v57, %v405_v57  ;;  %v970_v57 = vld [vmem:[#allocation13 + $0x208] sm:$0xff]  ;;  %v3024_v61 = vcombine.high %v969_v55, %v973_v56 }
 0x243   :  { %v408_v0 = vpack.c.bf16 %v406_v60, %v406_v60  ;;  %v3017_v60 = vcombine.low %v962_v48, %v966_v50  ;;  %v3026_v62 = vcombine.high %v970_v57, %v974_v58  ;;  %v3025_v4 = vcombine.low %v970_v57, %v974_v58 }
 0x245   :  { %847 = vmatprep.mubr.bf16.mxu1 %v408_v0  ;;  %888 = vmatprep.mubr.bf16.mxu0 %v408_v0  ;;  %v981_v0 = vld [vmem:[#allocation13 + $0x260] sm:$0xff] }
 0x246   :  { %848 = vmatmul.mubr.bf16.vlgmr.msra.gmra.mrb[8].mxu1 %v407_v1  ;;  %889 = vmatmul.mubr.bf16.vlgmr.msra.gmra.mrb[4].mxu0 %v407_v1  ;;  %v978_v1 = vld [vmem:[#allocation13 + $0x248] sm:$0xff]  ;;  %v3032_v5 = vcombine.high %v977_v63, %v981_v0 }
 0x247   :  { %2484 = vmatpush1.bf16.msra.mxu1 %v2959_v40  ;;  %2566 = vmatpush1.bf16.msra.mxu0 %v2961_v43  ;;  %v2999_v40 = vcombine.low %v945_v28, %v949_v29  ;;  %v3010_v43 = vcombine.high %v954_v38, %v958_v39 }
 0x248   :  { %2485 = vmatprep.subr.bf16.mxu1 %v2968_v2  ;;  %2567 = vmatprep.subr.bf16.mxu0 %v2970_v3  ;;  %v982_v2 = vld [vmem:[#allocation13 + $0x268] sm:$0xff]  ;;  %v3023_v3 = vcombine.low %v969_v55, %v973_v56 }
 0x249   :  { %v3034_v6 = vcombine.high %v978_v1, %v982_v2  ;;  %v3033_v12 = vcombine.low %v978_v1, %v982_v2  ;;  %v1030_v56 = vld [vmem:[#allocation13 + $0x3e8] sm:$0xff] }
 0x24b   :  { %2486 = vmatpush1.bf16.msra.mxu1 %v2967_v8  ;;  %2568 = vmatpush1.bf16.msra.mxu0 %v2969_v9  ;;  %v989_v8 = vld [vmem:[#allocation13 + $0x2a0] sm:$0xff]  ;;  %v986_v9 = vld [vmem:[#allocation13 + $0x288] sm:$0xff] }
 0x24c   :  { %2487 = vmatprep.subr.bf16.mxu1 %v2976_v10  ;;  %2569 = vmatprep.subr.bf16.mxu0 %v2978_v11  ;;  %v990_v10 = vld [vmem:[#allocation13 + $0x2a8] sm:$0xff]  ;;  %v3031_v11 = vcombine.low %v977_v63, %v981_v0  ;;  %v3040_v13 = vcombine.high %v985_v7, %v989_v8 }
 0x24d   :  { %v3042_v14 = vcombine.high %v986_v9, %v990_v10  ;;  %v3041_v20 = vcombine.low %v986_v9, %v990_v10  ;;  %v1038_v0 = vld [vmem:[#allocation13 + $0x428] sm:$0xff] }
 0x24f   :  { %2488 = vmatpush1.bf16.msra.mxu1 %v2975_v16  ;;  %2570 = vmatpush1.bf16.msra.mxu0 %v2977_v17  ;;  %v997_v16 = vld [vmem:[#allocation13 + $0x2e0] sm:$0xff]  ;;  %v994_v17 = vld [vmem:[#allocation13 + $0x2c8] sm:$0xff] }
 0x250   :  { %2489 = vmatprep.subr.bf16.mxu1 %v2984_v18  ;;  %2571 = vmatprep.subr.bf16.mxu0 %v2986_v19  ;;  %v998_v18 = vld [vmem:[#allocation13 + $0x2e8] sm:$0xff]  ;;  %v3039_v19 = vcombine.low %v985_v7, %v989_v8  ;;  %v3048_v21 = vcombine.high %v993_v15, %v997_v16 }
 0x251   :  { %v3050_v22 = vcombine.high %v994_v17, %v998_v18  ;;  %v3049_v28 = vcombine.low %v994_v17, %v998_v18 }
 0x253   :  { %2490 = vmatpush1.bf16.msra.mxu1 %v2983_v24  ;;  %2572 = vmatpush1.bf16.msra.mxu0 %v2985_v25  ;;  %v1005_v24 = vld [vmem:[#allocation13 + $0x320] sm:$0xff]  ;;  %v1002_v25 = vld [vmem:[#allocation13 + $0x308] sm:$0xff] }
 0x254   :  { %2491 = vmatprep.subr.bf16.mxu1 %v2992_v26  ;;  %2573 = vmatprep.subr.bf16.mxu0 %v2994_v27  ;;  %v1006_v26 = vld [vmem:[#allocation13 + $0x328] sm:$0xff]  ;;  %v3047_v27 = vcombine.low %v993_v15, %v997_v16  ;;  %v3056_v29 = vcombine.high %v1001_v23, %v1005_v24 }
 0x255   :  { %v3058_v30 = vcombine.high %v1002_v25, %v1006_v26  ;;  %v3057_v36 = vcombine.low %v1002_v25, %v1006_v26  ;;  %v1042_v25 = vld [vmem:[#allocation13 + $0x448] sm:$0xff] }
 0x256   :  { %v1046_v26 = vld [vmem:[#allocation13 + $0x468] sm:$0xff] }
 0x257   :  { %2492 = vmatpush1.bf16.msra.mxu1 %v2991_v32  ;;  %2574 = vmatpush1.bf16.msra.mxu0 %v2993_v33  ;;  %v1013_v32 = vld [vmem:[#allocation13 + $0x360] sm:$0xff]  ;;  %v1010_v33 = vld [vmem:[#allocation13 + $0x348] sm:$0xff] }
 0x258   :  { %2493 = vmatprep.subr.bf16.mxu1 %v3000_v34  ;;  %2575 = vmatprep.subr.bf16.mxu0 %v3002_v35  ;;  %v1014_v34 = vld [vmem:[#allocation13 + $0x368] sm:$0xff]  ;;  %v3055_v35 = vcombine.low %v1001_v23, %v1005_v24  ;;  %v3064_v37 = vcombine.high %v1009_v31, %v1013_v32  ;;  %v3063_v39 = vcombine.low %v1009_v31, %v1013_v32  ;;  %v1045_v24 = vld [vmem:[#allocation13 + $0x460] sm:$0xff] }
 0x259   :  { %v3066_v38 = vcombine.high %v1010_v33, %v1014_v34  ;;  %v3098_v31 = vcombine.high %v1042_v25, %v1046_v26  ;;  %v1053_v32 = vld [vmem:[#allocation13 + $0x4a0] sm:$0xff] }
 0x25b   :  { %2494 = vmatpush1.bf16.msra.mxu1 %v2999_v40  ;;  %2576 = vmatpush1.bf16.msra.mxu0 %v3001_v41  ;;  %v3065_v40 = vcombine.low %v1010_v33, %v1014_v34  ;;  %v1017_v41 = vld [vmem:[#allocation13 + $0x380] sm:$0xff]  ;;  %v1050_v33 = vld [vmem:[#allocation13 + $0x488] sm:$0xff] }
 0x25c   :  { %2495 = vmatprep.subr.bf16.mxu1 %v3008_v42  ;;  %2577 = vmatprep.subr.bf16.mxu0 %v3010_v43  ;;  %v1021_v42 = vld [vmem:[#allocation13 + $0x3a0] sm:$0xff]  ;;  %v1018_v43 = vld [vmem:[#allocation13 + $0x388] sm:$0xff] }
 0x25d   :  { %v3072_v44 = vcombine.high %v1017_v41, %v1021_v42  ;;  %v3071_v48 = vcombine.low %v1017_v41, %v1021_v42  ;;  %v3073_v50 = vcombine.low %v1018_v43, %v1022_v45  ;;  %v1054_v34 = vld [vmem:[#allocation13 + $0x4a8] sm:$0xff]  ;;  %v1061_v41 = vld [vmem:[#allocation13 + $0x4e0] sm:$0xff] }
 0x25e   :  { %v1058_v42 = vld [vmem:[#allocation13 + $0x4c8] sm:$0xff] }
 0x25f   :  { %2496 = vmatpush1.bf16.msra.mxu1 %v3007_v51  ;;  %2578 = vmatpush1.bf16.msra.mxu0 %v3009_v52  ;;  %v3074_v51 = vcombine.high %v1018_v43, %v1022_v45  ;;  %v1025_v52 = vld [vmem:[#allocation13 + $0x3c0] sm:$0xff]  ;;  %v1062_v43 = vld [vmem:[#allocation13 + $0x4e8] sm:$0xff]  ;;  %v3105_v45 = vcombine.low %v1050_v33, %v1054_v34 }
 0x260   :  { %2497 = vmatprep.subr.bf16.mxu1 %v3016_v53  ;;  %2579 = vmatprep.subr.bf16.mxu0 %v3018_v54  ;;  %v1029_v53 = vld [vmem:[#allocation13 + $0x3e0] sm:$0xff]  ;;  %v1026_v54 = vld [vmem:[#allocation13 + $0x3c8] sm:$0xff] }
 0x261   :  { %v3080_v55 = vcombine.high %v1025_v52, %v1029_v53  ;;  %v3079_v57 = vcombine.low %v1025_v52, %v1029_v53  ;;  %v3081_v58 = vcombine.low %v1026_v54, %v1030_v56  ;;  %v1069_v52 = vld [vmem:[#allocation13 + $0x520] sm:$0xff]  ;;  %v1066_v53 = vld [vmem:[#allocation13 + $0x508] sm:$0xff] }
 0x263   :  { %2498 = vmatpush1.bf16.msra.mxu1 %v3015_v59  ;;  %2580 = vmatpush1.bf16.msra.mxu0 %v3017_v60  ;;  %v3082_v59 = vcombine.high %v1026_v54, %v1030_v56  ;;  %v1033_v60 = vld [vmem:[#allocation13 + $0x400] sm:$0xff]  ;;  %v1070_v54 = vld [vmem:[#allocation13 + $0x528] sm:$0xff]  ;;  %v3113_v56 = vcombine.low %v1058_v42, %v1062_v43 }
 0x264   :  { %2499 = vmatprep.subr.bf16.mxu1 %v3024_v61  ;;  %2581 = vmatprep.subr.bf16.mxu0 %v3026_v62  ;;  %v1037_v61 = vld [vmem:[#allocation13 + $0x420] sm:$0xff]  ;;  %v1034_v62 = vld [vmem:[#allocation13 + $0x408] sm:$0xff] }
 0x265   :  { %v3088_v63 = vcombine.high %v1033_v60, %v1037_v61  ;;  %v3087_v1 = vcombine.low %v1033_v60, %v1037_v61  ;;  %v3089_v2 = vcombine.low %v1034_v62, %v1038_v0  ;;  %v1077_v60 = vld [vmem:[#allocation13 + $0x560] sm:$0xff]  ;;  %v1074_v61 = vld [vmem:[#allocation13 + $0x548] sm:$0xff] }
 0x267   :  { %2500 = vmatpush1.bf16.msra.mxu1 %v3023_v3  ;;  %2582 = vmatpush1.bf16.msra.mxu0 %v3025_v4  ;;  %v3090_v3 = vcombine.high %v1034_v62, %v1038_v0  ;;  %v3778_v4 = vld [vmem:[%s3852_s8] sm:$0xf]  ;;  %v1078_v62 = vld [vmem:[#allocation13 + $0x568] sm:$0xff]  ;;  %v3121_v0 = vcombine.low %v1066_v53, %v1070_v54 }
 0x268   :  { %2501 = vmatprep.subr.bf16.mxu1 %v3032_v5  ;;  %2583 = vmatprep.subr.bf16.mxu0 %v3034_v6  ;;  %v489_v5 = vsub.s32 3, %v3762_v46  ;;  %v478_v6 = vrot.slane %v3778_v4, %v3765_v47  ;;  %v482_v7 = vrot.slane %v3778_v4, %v3771_v49 }
 0x26a   :  { %v490_v8 = vrot.slane %v3778_v4, %v489_v5 }
 0x26b   :  { %2502 = vmatpush1.bf16.msra.mxu1 %v3031_v11  ;;  %2584 = vmatpush1.bf16.msra.mxu0 %v3033_v12 }
 0x26c   :  { %2503 = vmatprep.subr.bf16.mxu1 %v3040_v13  ;;  %2585 = vmatprep.subr.bf16.mxu0 %v3042_v14 }
 0x26f   :  { %2504 = vmatpush1.bf16.msra.mxu1 %v3039_v19  ;;  %2586 = vmatpush1.bf16.msra.mxu0 %v3041_v20 }
 0x270   :  { %2505 = vmatprep.subr.bf16.mxu1 %v3048_v21  ;;  %2587 = vmatprep.subr.bf16.mxu0 %v3050_v22  ;;  %v1041_v22 = vld [vmem:[#allocation13 + $0x440] sm:$0xff] }
 0x273   :  { %2506 = vmatpush1.bf16.msra.mxu1 %v3047_v27  ;;  %2588 = vmatpush1.bf16.msra.mxu0 %v3049_v28 }
 0x274   :  { %2507 = vmatprep.subr.bf16.mxu1 %v3056_v29  ;;  %2589 = vmatprep.subr.bf16.mxu0 %v3058_v30  ;;  %v1049_v29 = vld [vmem:[#allocation13 + $0x480] sm:$0xff]  ;;  %v3096_v30 = vcombine.high %v1041_v22, %v1045_v24 }
 0x277   :  { %2508 = vmatpush1.bf16.msra.mxu1 %v3055_v35  ;;  %2590 = vmatpush1.bf16.msra.mxu0 %v3057_v36  ;;  %v3095_v36 = vcombine.low %v1041_v22, %v1045_v24  ;;  %v1097_v22 = vld [vmem:[#allocation13 + $0x600] sm:$0xff]  ;;  %v1098_v24 = vld [vmem:[#allocation13 + $0x608] sm:$0xff] }
 0x278   :  { %2509 = vmatprep.subr.bf16.mxu1 %v3064_v37  ;;  %2591 = vmatprep.subr.bf16.mxu0 %v3066_v38  ;;  %v3097_v37 = vcombine.low %v1042_v25, %v1046_v26  ;;  %v3104_v38 = vcombine.high %v1049_v29, %v1053_v32  ;;  %v1102_v25 = vld [vmem:[#allocation13 + $0x628] sm:$0xff] }
 0x27b   :  { %2510 = vmatpush1.bf16.msra.mxu1 %v3063_v39  ;;  %2592 = vmatpush1.bf16.msra.mxu0 %v3065_v40  ;;  %v3106_v39 = vcombine.high %v1050_v33, %v1054_v34  ;;  %v1057_v40 = vld [vmem:[#allocation13 + $0x4c0] sm:$0xff]  ;;  %v1106_v34 = vld [vmem:[#allocation13 + $0x648] sm:$0xff] }
 0x27c   :  { %2511 = vmatprep.subr.bf16.mxu1 %v3072_v44  ;;  %2593 = vmatprep.subr.bf16.mxu0 %v3074_v51  ;;  %v3103_v44 = vcombine.low %v1049_v29, %v1053_v32  ;;  %v1065_v51 = vld [vmem:[#allocation13 + $0x500] sm:$0xff] }
 0x27d   :  { %v1105_v32 = vld [vmem:[#allocation13 + $0x640] sm:$0xff] }
 0x27e   :  { %v1109_v33 = vld [vmem:[#allocation13 + $0x660] sm:$0xff] }
 0x27f   :  { %2512 = vmatpush1.bf16.msra.mxu1 %v3071_v48  ;;  %2594 = vmatpush1.bf16.msra.mxu0 %v3073_v50  ;;  %v3112_v48 = vcombine.high %v1057_v40, %v1061_v41  ;;  %v3114_v50 = vcombine.high %v1058_v42, %v1062_v43  ;;  %v1117_v42 = vld [vmem:[#allocation13 + $0x6a0] sm:$0xff]  ;;  %v1114_v43 = vld [vmem:[#allocation13 + $0x688] sm:$0xff] }
 0x280   :  { %2513 = vmatprep.subr.bf16.mxu1 %v3080_v55  ;;  %2595 = vmatprep.subr.bf16.mxu0 %v3082_v59  ;;  %v3111_v55 = vcombine.low %v1057_v40, %v1061_v41  ;;  %v1073_v59 = vld [vmem:[#allocation13 + $0x540] sm:$0xff] }
 0x281   :  { %v1113_v41 = vld [vmem:[#allocation13 + $0x680] sm:$0xff] }
 0x283   :  { %2514 = vmatpush1.bf16.msra.mxu1 %v3079_v57  ;;  %2596 = vmatpush1.bf16.msra.mxu0 %v3081_v58  ;;  %v3120_v57 = vcombine.high %v1065_v51, %v1069_v52  ;;  %v3122_v58 = vcombine.high %v1066_v53, %v1070_v54  ;;  %v1125_v53 = vld [vmem:[#allocation13 + $0x6e0] sm:$0xff]  ;;  %v1122_v54 = vld [vmem:[#allocation13 + $0x6c8] sm:$0xff] }
 0x284   :  { %2524 = vmatprep.subr.bf16.mxu1 %v3088_v63  ;;  %2606 = vmatprep.subr.bf16.mxu0 %v3090_v3  ;;  %v3119_v63 = vcombine.low %v1065_v51, %v1069_v52  ;;  %v1081_v3 = vld [vmem:[#allocation13 + $0x580] sm:$0xff] }
 0x285   :  { %v1121_v52 = vld [vmem:[#allocation13 + $0x6c0] sm:$0xff] }
 0x319   :  { %v849_v9 = vpop.f32.mrb[8].mxu1  ;;  %v3788_v10 = vpop.f32.mrb[4].mxu0 }
 0x31a   :  { %v850_v11 = vadd.f32 %v849_v9, %v478_v6  ;;  %v851_v12 = vpop.f32.mrb[9].mxu1  ;;  %v892_v13 = vpop.f32.mrb[5].mxu0  ;;  %v1085_v6 = vld [vmem:[#allocation13 + $0x5a0] sm:$0xff]  ;;  %v3127_v9 = vcombine.low %v1073_v59, %v1077_v60 }
 0x31b   :  { %v852_v14 = vadd.f32 %v851_v12, %v482_v7  ;;  %v893_v15 = vadd.f32 %v892_v13, %v490_v8  ;;  %v853_v16 = vpop.f32.mrb[10].mxu1  ;;  %v894_v17 = vpop.f32.mrb[6].mxu0  ;;  %v1082_v7 = vld [vmem:[#allocation13 + $0x588] sm:$0xff]  ;;  %v3136_v12 = vcombine.high %v1081_v3, %v1085_v6 }
 0x31c   :  { %v897_v18 = vmax.f32 %v850_v11, 0.0  ;;  %v854_v19 = vpop.f32.mrb[11].mxu1  ;;  %v895_v20 = vpop.f32.mrb[7].mxu0  ;;  %v1086_v8 = vld [vmem:[#allocation13 + $0x5a8] sm:$0xff]  ;;  %v3129_v11 = vcombine.low %v1074_v61, %v1078_v62 }
 0x31d   :  { %v898_v21 = vmax.f32 %v852_v14, 0.0  ;;  %v900_v23 = vmax.f32 %v893_v15, 0.0  ;;  %v3138_v13 = vcombine.high %v1082_v7, %v1086_v8  ;;  %v1089_v14 = vld [vmem:[#allocation13 + $0x5c0] sm:$0xff]  ;;  %v1090_v16 = vld [vmem:[#allocation13 + $0x5c8] sm:$0xff]  ;;  %v3137_v19 = vcombine.low %v1082_v7, %v1086_v8 }
 0x31e   :  { %v3792_v28 = vpack.c.bf16 %v897_v18, %v897_v18  ;;  %v1093_v15 = vld [vmem:[#allocation13 + $0x5e0] sm:$0xff]  ;;  %v1094_v17 = vld [vmem:[#allocation13 + $0x5e8] sm:$0xff]  ;;  %v3135_v18 = vcombine.low %v1081_v3, %v1085_v6 }
 0x31f   :  { %v3790_v27 = vpack.c.bf16 %v898_v21, %v898_v21  ;;  %v3796_v35 = vpack.c.bf16 %v900_v23, %v900_v23  ;;  %v3144_v20 = vcombine.high %v1089_v14, %v1093_v15  ;;  %v3146_v21 = vcombine.high %v1090_v16, %v1094_v17  ;;  %v1101_v23 = vld [vmem:[#allocation13 + $0x620] sm:$0xff]  ;;  %v1138_v8 = vld [vmem:[#allocation13 + $0x748] sm:$0xff] }
 0x320   :  { %v3143_v26 = vcombine.low %v1089_v14, %v1093_v15  ;;  %v3145_v29 = vcombine.low %v1090_v16, %v1094_v17  ;;  %v1137_v6 = vld [vmem:[#allocation13 + $0x740] sm:$0xff] }
 0x321   :  { %2515 = vmatprep.mubr.bf16.mxu1 %v3790_v27  ;;  %2597 = vmatprep.mubr.bf16.mxu0 %v3790_v27  ;;  %v1141_v7 = vld [vmem:[#allocation13 + $0x760] sm:$0xff] }
 0x322   :  { %2516 = vmatmul.mubr.bf16.vlgmr.msra.gmra.mrb[12].mxu1 %v3792_v28  ;;  %2598 = vmatmul.mubr.bf16.vlgmr.msra.gmra.mrb[8].mxu0 %v3792_v28  ;;  %v3192_v14 = vcombine.high %v1137_v6, %v1141_v7  ;;  %v1145_v16 = vld [vmem:[#allocation13 + $0x780] sm:$0xff] }
 0x323   :  { %2525 = vmatpush1.bf16.msra.mxu1 %v3087_v1  ;;  %2607 = vmatpush1.bf16.msra.mxu0 %v3089_v2  ;;  %v3128_v1 = vcombine.high %v1073_v59, %v1077_v60  ;;  %v3130_v2 = vcombine.high %v1074_v61, %v1078_v62  ;;  %v1129_v60 = vld [vmem:[#allocation13 + $0x700] sm:$0xff]  ;;  %v1130_v62 = vld [vmem:[#allocation13 + $0x708] sm:$0xff] }
 0x324   :  { %2556 = vmatprep.mubr.bf16.mxu1 %v3796_v35  ;;  %2638 = vmatprep.mubr.bf16.mxu0 %v3796_v35  ;;  %v1133_v61 = vld [vmem:[#allocation13 + $0x720] sm:$0xff] }
 0x325   :  { %2526 = vmatprep.subr.bf16.mxu1 %v3096_v30  ;;  %2608 = vmatprep.subr.bf16.mxu0 %v3098_v31  ;;  %v3152_v30 = vcombine.high %v1097_v22, %v1101_v23  ;;  %v3154_v31 = vcombine.high %v1098_v24, %v1102_v25  ;;  %v1149_v17 = vld [vmem:[#allocation13 + $0x7a0] sm:$0xff] }
 0x327   :  { %2527 = vmatpush1.bf16.msra.mxu1 %v3095_v36  ;;  %2609 = vmatpush1.bf16.msra.mxu0 %v3097_v37  ;;  %v1110_v36 = vld [vmem:[#allocation13 + $0x668] sm:$0xff]  ;;  %v3151_v37 = vcombine.low %v1097_v22, %v1101_v23  ;;  %v3200_v23 = vcombine.high %v1145_v16, %v1149_v17 }
 0x328   :  { %2528 = vmatprep.subr.bf16.mxu1 %v3104_v38  ;;  %2610 = vmatprep.subr.bf16.mxu0 %v3106_v39  ;;  %v3153_v38 = vcombine.low %v1098_v24, %v1102_v25  ;;  %v3160_v39 = vcombine.high %v1105_v32, %v1109_v33  ;;  %v3162_v40 = vcombine.high %v1106_v34, %v1110_v36  ;;  %v1153_v25 = vld [vmem:[#allocation13 + $0x7c0] sm:$0xff] }
 0x32b   :  { %2529 = vmatpush1.bf16.msra.mxu1 %v3103_v44  ;;  %2611 = vmatpush1.bf16.msra.mxu0 %v3105_v45  ;;  %v1118_v44 = vld [vmem:[#allocation13 + $0x6a8] sm:$0xff]  ;;  %v3159_v45 = vcombine.low %v1105_v32, %v1109_v33 }
 0x32c   :  { %2530 = vmatprep.subr.bf16.mxu1 %v3112_v48  ;;  %2612 = vmatprep.subr.bf16.mxu0 %v3114_v50  ;;  %v3161_v48 = vcombine.low %v1106_v34, %v1110_v36  ;;  %v3168_v50 = vcombine.high %v1113_v41, %v1117_v42  ;;  %v3170_v51 = vcombine.high %v1114_v43, %v1118_v44 }
 0x32f   :  { %2531 = vmatpush1.bf16.msra.mxu1 %v3111_v55  ;;  %2613 = vmatpush1.bf16.msra.mxu0 %v3113_v56  ;;  %v1126_v55 = vld [vmem:[#allocation13 + $0x6e8] sm:$0xff]  ;;  %v3167_v56 = vcombine.low %v1113_v41, %v1117_v42 }
 0x330   :  { %2532 = vmatprep.subr.bf16.mxu1 %v3120_v57  ;;  %2614 = vmatprep.subr.bf16.mxu0 %v3122_v58  ;;  %v3169_v57 = vcombine.low %v1114_v43, %v1118_v44  ;;  %v3176_v58 = vcombine.high %v1121_v52, %v1125_v53  ;;  %v3178_v59 = vcombine.high %v1122_v54, %v1126_v55 }
 0x333   :  { %2533 = vmatpush1.bf16.msra.mxu1 %v3119_v63  ;;  %2615 = vmatpush1.bf16.msra.mxu0 %v3121_v0  ;;  %v1134_v63 = vld [vmem:[#allocation13 + $0x728] sm:$0xff]  ;;  %v3175_v0 = vcombine.low %v1121_v52, %v1125_v53 }
 0x334   :  { %2534 = vmatprep.subr.bf16.mxu1 %v3128_v1  ;;  %2616 = vmatprep.subr.bf16.mxu0 %v3130_v2  ;;  %v3177_v1 = vcombine.low %v1122_v54, %v1126_v55  ;;  %v3184_v2 = vcombine.high %v1129_v60, %v1133_v61  ;;  %v3186_v3 = vcombine.high %v1130_v62, %v1134_v63 }
 0x337   :  { %2535 = vmatpush1.bf16.msra.mxu1 %v3127_v9  ;;  %2617 = vmatpush1.bf16.msra.mxu0 %v3129_v11  ;;  %v1142_v9 = vld [vmem:[#allocation13 + $0x768] sm:$0xff]  ;;  %v3183_v11 = vcombine.low %v1129_v60, %v1133_v61 }
 0x338   :  { %2536 = vmatprep.subr.bf16.mxu1 %v3136_v12  ;;  %2618 = vmatprep.subr.bf16.mxu0 %v3138_v13  ;;  %v3185_v12 = vcombine.low %v1130_v62, %v1134_v63  ;;  %v485_v13 = vsub.s32 2, %v3762_v46  ;;  %v3194_v15 = vcombine.high %v1138_v8, %v1142_v9 }
 0x33a   :  { %v486_v22 = vrot.slane %v3778_v4, %v485_v13  ;;  %v911_v4 = vld [vmem:[#allocation13 + $0x30] sm:$0xff] }
 0x33b   :  { %2537 = vmatpush1.bf16.msra.mxu1 %v3135_v18  ;;  %2619 = vmatpush1.bf16.msra.mxu0 %v3137_v19  ;;  %v1146_v18 = vld [vmem:[#allocation13 + $0x788] sm:$0xff] }
 0x33c   :  { %2538 = vmatprep.subr.bf16.mxu1 %v3144_v20  ;;  %2620 = vmatprep.subr.bf16.mxu0 %v3146_v21  ;;  %v1150_v19 = vld [vmem:[#allocation13 + $0x7a8] sm:$0xff]  ;;  %v3191_v20 = vcombine.low %v1137_v6, %v1141_v7  ;;  %v3193_v21 = vcombine.low %v1138_v8, %v1142_v9  ;;  %v891_v33 = vadd.f32 %v3788_v10, %v486_v22  ;;  %v916_v10 = vld [vmem:[#allocation13 + $0x58] sm:$0xff] }
 0x33d   :  { %v3202_v24 = vcombine.high %v1146_v18, %v1150_v19  ;;  %v3201_v32 = vcombine.low %v1146_v18, %v1150_v19  ;;  %v947_v19 = vld [vmem:[#allocation13 + $0x150] sm:$0xff]  ;;  %v952_v22 = vld [vmem:[#allocation13 + $0x178] sm:$0xff] }
 0x33e   :  { %v899_v42 = vmax.f32 %v891_v33, 0.0 }
 0x33f   :  { %2539 = vmatpush1.bf16.msra.mxu1 %v3143_v26  ;;  %2621 = vmatpush1.bf16.msra.mxu0 %v3145_v29  ;;  %v1157_v26 = vld [vmem:[#allocation13 + $0x7e0] sm:$0xff]  ;;  %v1154_v29 = vld [vmem:[#allocation13 + $0x7c8] sm:$0xff] }
 0x340   :  { %2540 = vmatprep.subr.bf16.mxu1 %v3152_v30  ;;  %2622 = vmatprep.subr.bf16.mxu0 %v3154_v31  ;;  %v1158_v30 = vld [vmem:[#allocation13 + $0x7e8] sm:$0xff]  ;;  %v3199_v31 = vcombine.low %v1145_v16, %v1149_v17  ;;  %v3208_v34 = vcombine.high %v1153_v25, %v1157_v26  ;;  %v3807_v52 = vpack.c.bf16 %v899_v42, %v899_v42 }
 0x341   :  { %v3210_v36 = vcombine.high %v1154_v29, %v1158_v30  ;;  %v3209_v41 = vcombine.low %v1154_v29, %v1158_v30  ;;  %v955_v29 = vld [vmem:[#allocation13 + $0x190] sm:$0xff] }
 0x342   :  { %v959_v30 = vld [vmem:[#allocation13 + $0x1b0] sm:$0xff] }
 0x343   :  { %2541 = vmatpush1.bf16.msra.mxu1 %v3151_v37  ;;  %2623 = vmatpush1.bf16.msra.mxu0 %v3153_v38  ;;  %v907_v37 = vld [vmem:[#allocation13 + $0x10] sm:$0xff]  ;;  %v908_v38 = vld [vmem:[#allocation13 + $0x18] sm:$0xff] }
 0x344   :  { %2542 = vmatprep.subr.bf16.mxu1 %v3160_v39  ;;  %2624 = vmatprep.subr.bf16.mxu0 %v3162_v40  ;;  %v912_v39 = vld [vmem:[#allocation13 + $0x38] sm:$0xff]  ;;  %v3207_v40 = vcombine.low %v1153_v25, %v1157_v26  ;;  %v2964_v43 = vcombine.high %v907_v37, %v911_v4 }
 0x345   :  { %v2966_v44 = vcombine.high %v908_v38, %v912_v39  ;;  %v2965_v53 = vcombine.low %v908_v38, %v912_v39  ;;  %v967_v38 = vld [vmem:[#allocation13 + $0x1f0] sm:$0xff]  ;;  %v964_v39 = vld [vmem:[#allocation13 + $0x1d8] sm:$0xff] }
 0x347   :  { %2543 = vmatpush1.bf16.msra.mxu1 %v3159_v45  ;;  %2625 = vmatpush1.bf16.msra.mxu0 %v3161_v48  ;;  %v915_v45 = vld [vmem:[#allocation13 + $0x50] sm:$0xff] }
 0x348   :  { %2544 = vmatprep.subr.bf16.mxu1 %v3168_v50  ;;  %2626 = vmatprep.subr.bf16.mxu0 %v3170_v51  ;;  %v919_v48 = vld [vmem:[#allocation13 + $0x70] sm:$0xff]  ;;  %v920_v50 = vld [vmem:[#allocation13 + $0x78] sm:$0xff]  ;;  %v2963_v51 = vcombine.low %v907_v37, %v911_v4 }
 0x349   :  { %v2972_v54 = vcombine.high %v915_v45, %v919_v48  ;;  %v2974_v55 = vcombine.high %v916_v10, %v920_v50  ;;  %v2971_v60 = vcombine.low %v915_v45, %v919_v48  ;;  %v2973_v61 = vcombine.low %v916_v10, %v920_v50  ;;  %v963_v4 = vld [vmem:[#allocation13 + $0x1d0] sm:$0xff]  ;;  %v972_v10 = vld [vmem:[#allocation13 + $0x218] sm:$0xff] }
 0x34a   :  { %v971_v45 = vld [vmem:[#allocation13 + $0x210] sm:$0xff]  ;;  %v976_v50 = vld [vmem:[#allocation13 + $0x238] sm:$0xff] }
 0x34b   :  { %2545 = vmatpush1.bf16.msra.mxu1 %v3167_v56  ;;  %2627 = vmatpush1.bf16.msra.mxu0 %v3169_v57  ;;  %v923_v56 = vld [vmem:[#allocation13 + $0x90] sm:$0xff] }
 0x34c   :  { %2546 = vmatprep.subr.bf16.mxu1 %v3176_v58  ;;  %2628 = vmatprep.subr.bf16.mxu0 %v3178_v59  ;;  %v927_v57 = vld [vmem:[#allocation13 + $0xb0] sm:$0xff]  ;;  %v924_v58 = vld [vmem:[#allocation13 + $0x98] sm:$0xff] }
 0x34d   :  { %v928_v59 = vld [vmem:[#allocation13 + $0xb8] sm:$0xff]  ;;  %v2980_v62 = vcombine.high %v923_v56, %v927_v57  ;;  %v2979_v6 = vcombine.low %v923_v56, %v927_v57  ;;  %v975_v48 = vld [vmem:[#allocation13 + $0x230] sm:$0xff] }
 0x34e   :  { %v2982_v63 = vcombine.high %v924_v58, %v928_v59  ;;  %v2981_v7 = vcombine.low %v924_v58, %v928_v59  ;;  %v979_v56 = vld [vmem:[#allocation13 + $0x250] sm:$0xff]  ;;  %v980_v58 = vld [vmem:[#allocation13 + $0x258] sm:$0xff] }
 0x34f   :  { %2547 = vmatpush1.bf16.msra.mxu1 %v3175_v0  ;;  %2629 = vmatpush1.bf16.msra.mxu0 %v3177_v1  ;;  %v931_v0 = vld [vmem:[#allocation13 + $0xd0] sm:$0xff]  ;;  %v984_v59 = vld [vmem:[#allocation13 + $0x278] sm:$0xff] }
 0x350   :  { %2548 = vmatprep.subr.bf16.mxu1 %v3184_v2  ;;  %2630 = vmatprep.subr.bf16.mxu0 %v3186_v3  ;;  %v935_v1 = vld [vmem:[#allocation13 + $0xf0] sm:$0xff]  ;;  %v932_v2 = vld [vmem:[#allocation13 + $0xd8] sm:$0xff] }
 0x351   :  { %v936_v3 = vld [vmem:[#allocation13 + $0xf8] sm:$0xff]  ;;  %v2988_v8 = vcombine.high %v931_v0, %v935_v1  ;;  %v983_v57 = vld [vmem:[#allocation13 + $0x270] sm:$0xff] }
 0x352   :  { %v2990_v9 = vcombine.high %v932_v2, %v936_v3  ;;  %v2989_v16 = vcombine.low %v932_v2, %v936_v3  ;;  %v988_v2 = vld [vmem:[#allocation13 + $0x298] sm:$0xff] }
 0x353   :  { %2549 = vmatpush1.bf16.msra.mxu1 %v3183_v11  ;;  %2631 = vmatpush1.bf16.msra.mxu0 %v3185_v12  ;;  %v939_v11 = vld [vmem:[#allocation13 + $0x110] sm:$0xff]  ;;  %v992_v3 = vld [vmem:[#allocation13 + $0x2b8] sm:$0xff] }
 0x354   :  { %2550 = vmatprep.subr.bf16.mxu1 %v3192_v14  ;;  %2632 = vmatprep.subr.bf16.mxu0 %v3194_v15  ;;  %v943_v12 = vld [vmem:[#allocation13 + $0x130] sm:$0xff]  ;;  %v944_v14 = vld [vmem:[#allocation13 + $0x138] sm:$0xff]  ;;  %v2987_v15 = vcombine.low %v931_v0, %v935_v1 }
 0x355   :  { %v2996_v17 = vcombine.high %v939_v11, %v943_v12  ;;  %v987_v0 = vld [vmem:[#allocation13 + $0x290] sm:$0xff] }
 0x356   :  { %v991_v1 = vld [vmem:[#allocation13 + $0x2b0] sm:$0xff] }
 0x357   :  { %2551 = vmatpush1.bf16.msra.mxu1 %v3191_v20  ;;  %2633 = vmatpush1.bf16.msra.mxu0 %v3193_v21  ;;  %v951_v20 = vld [vmem:[#allocation13 + $0x170] sm:$0xff]  ;;  %v948_v21 = vld [vmem:[#allocation13 + $0x158] sm:$0xff] }
 0x358   :  { %2552 = vmatprep.subr.bf16.mxu1 %v3200_v23  ;;  %2634 = vmatprep.subr.bf16.mxu0 %v3202_v24  ;;  %v2995_v23 = vcombine.low %v939_v11, %v943_v12  ;;  %v3004_v25 = vcombine.high %v947_v19, %v951_v20  ;;  %v3006_v26 = vcombine.high %v948_v21, %v952_v22  ;;  %v995_v11 = vld [vmem:[#allocation13 + $0x2d0] sm:$0xff] }
 0x359   :  { %v3003_v33 = vcombine.low %v947_v19, %v951_v20  ;;  %v999_v12 = vld [vmem:[#allocation13 + $0x2f0] sm:$0xff] }
 0x35a   :  { %v1003_v19 = vld [vmem:[#allocation13 + $0x310] sm:$0xff] }
 0x35b   :  { %2553 = vmatpush1.bf16.msra.mxu1 %v3199_v31  ;;  %2635 = vmatpush1.bf16.msra.mxu0 %v3201_v32  ;;  %v956_v31 = vld [vmem:[#allocation13 + $0x198] sm:$0xff]  ;;  %v1007_v20 = vld [vmem:[#allocation13 + $0x330] sm:$0xff] }
 0x35c   :  { %2554 = vmatprep.subr.bf16.mxu1 %v3208_v34  ;;  %2636 = vmatprep.subr.bf16.mxu0 %v3210_v36  ;;  %v960_v32 = vld [vmem:[#allocation13 + $0x1b8] sm:$0xff]  ;;  %v3005_v34 = vcombine.low %v948_v21, %v952_v22  ;;  %v3012_v36 = vcombine.high %v955_v29, %v959_v30 }
 0x35d   :  { %v3014_v37 = vcombine.high %v956_v31, %v960_v32  ;;  %v3013_v42 = vcombine.low %v956_v31, %v960_v32  ;;  %v1004_v21 = vld [vmem:[#allocation13 + $0x318] sm:$0xff] }
 0x35e   :  { %v1008_v22 = vld [vmem:[#allocation13 + $0x338] sm:$0xff] }
 0x35f   :  { %2555 = vmatpush1.bf16.msra.mxu1 %v3207_v40  ;;  %2637 = vmatpush1.bf16.msra.mxu0 %v3209_v41  ;;  %v968_v40 = vld [vmem:[#allocation13 + $0x1f8] sm:$0xff]  ;;  %v3011_v41 = vcombine.low %v955_v29, %v959_v30  ;;  %v1011_v29 = vld [vmem:[#allocation13 + $0x350] sm:$0xff] }
 0x360   :  { %2647 = vmatprep.subr.bf16.mxu1 %v2964_v43  ;;  %2729 = vmatprep.subr.bf16.mxu0 %v2966_v44  ;;  %v3020_v43 = vcombine.high %v963_v4, %v967_v38  ;;  %v3022_v44 = vcombine.high %v964_v39, %v968_v40  ;;  %v1015_v30 = vld [vmem:[#allocation13 + $0x370] sm:$0xff]  ;;  %v1012_v31 = vld [vmem:[#allocation13 + $0x358] sm:$0xff] }
 0x361   :  { %v1016_v32 = vld [vmem:[#allocation13 + $0x378] sm:$0xff] }
 0x362   :  { %2557 = vmatmul.mubr.bf16.vlgmr.msra.gmra.mrb[12].mxu1 %v3807_v52  ;;  %2639 = vmatmul.mubr.bf16.vlgmr.msra.gmra.mrb[8].mxu0 %v3807_v52 }
 0x363   :  { %2648 = vmatpush1.bf16.msra.mxu1 %v2963_v51  ;;  %2679 = vmatprep.mubr.bf16.mxu1 %v3790_v27  ;;  %v3019_v51 = vcombine.low %v963_v4, %v967_v38  ;;  %v1019_v4 = vld [vmem:[#allocation13 + $0x390] sm:$0xff] }
 0x364   :  { %2730 = vmatpush1.bf16.msra.mxu0 %v2965_v53  ;;  %2761 = vmatprep.mubr.bf16.mxu0 %v3790_v27  ;;  %v940_v27 = vld [vmem:[#allocation13 + $0x118] sm:$0xff]  ;;  %v3021_v53 = vcombine.low %v964_v39, %v968_v40  ;;  %v1023_v38 = vld [vmem:[#allocation13 + $0x3b0] sm:$0xff] }
 0x365   :  { %2649 = vmatprep.subr.bf16.mxu1 %v2972_v54  ;;  %2731 = vmatprep.subr.bf16.mxu0 %v2974_v55  ;;  %v2998_v18 = vcombine.high %v940_v27, %v944_v14  ;;  %v2997_v24 = vcombine.low %v940_v27, %v944_v14  ;;  %v3028_v54 = vcombine.high %v971_v45, %v975_v48  ;;  %v996_v27 = vld [vmem:[#allocation13 + $0x2d8] sm:$0xff] }
 0x366   :  { %v3030_v55 = vcombine.high %v972_v10, %v976_v50  ;;  %v1000_v14 = vld [vmem:[#allocation13 + $0x2f8] sm:$0xff] }
 0x367   :  { %2650 = vmatpush1.bf16.msra.mxu1 %v2971_v60  ;;  %v3027_v60 = vcombine.low %v971_v45, %v975_v48  ;;  %v1020_v39 = vld [vmem:[#allocation13 + $0x398] sm:$0xff]  ;;  %v1027_v45 = vld [vmem:[#allocation13 + $0x3d0] sm:$0xff] }
 0x368   :  { %2732 = vmatpush1.bf16.msra.mxu0 %v2973_v61  ;;  %2651 = vmatprep.subr.bf16.mxu1 %v2980_v62  ;;  %v3029_v61 = vcombine.low %v972_v10, %v976_v50  ;;  %v3036_v62 = vcombine.high %v979_v56, %v983_v57  ;;  %v1024_v40 = vld [vmem:[#allocation13 + $0x3b8] sm:$0xff]  ;;  %v1031_v48 = vld [vmem:[#allocation13 + $0x3f0] sm:$0xff] }
 0x369   :  { %2733 = vmatprep.subr.bf16.mxu0 %v2982_v63  ;;  %v3038_v63 = vcombine.high %v980_v58, %v984_v59  ;;  %v1028_v10 = vld [vmem:[#allocation13 + $0x3d8] sm:$0xff] }
 0x36a   :  { %v1032_v50 = vld [vmem:[#allocation13 + $0x3f8] sm:$0xff] }
 0x36b   :  { %2652 = vmatpush1.bf16.msra.mxu1 %v2979_v6  ;;  %v3035_v6 = vcombine.low %v979_v56, %v983_v57  ;;  %v1035_v56 = vld [vmem:[#allocation13 + $0x410] sm:$0xff] }
 0x36c   :  { %2734 = vmatpush1.bf16.msra.mxu0 %v2981_v7  ;;  %2653 = vmatprep.subr.bf16.mxu1 %v2988_v8  ;;  %v3037_v7 = vcombine.low %v980_v58, %v984_v59  ;;  %v3044_v8 = vcombine.high %v987_v0, %v991_v1  ;;  %v1039_v57 = vld [vmem:[#allocation13 + $0x430] sm:$0xff]  ;;  %v1036_v58 = vld [vmem:[#allocation13 + $0x418] sm:$0xff] }
 0x36d   :  { %2735 = vmatprep.subr.bf16.mxu0 %v2990_v9  ;;  %v3046_v9 = vcombine.high %v988_v2, %v992_v3  ;;  %v1040_v59 = vld [vmem:[#allocation13 + $0x438] sm:$0xff] }
 0x36f   :  { %2654 = vmatpush1.bf16.msra.mxu1 %v2987_v15  ;;  %v3043_v15 = vcombine.low %v987_v0, %v991_v1  ;;  %v1043_v0 = vld [vmem:[#allocation13 + $0x450] sm:$0xff] }
 0x370   :  { %2736 = vmatpush1.bf16.msra.mxu0 %v2989_v16  ;;  %2655 = vmatprep.subr.bf16.mxu1 %v2996_v17  ;;  %v3045_v16 = vcombine.low %v988_v2, %v992_v3  ;;  %v3052_v17 = vcombine.high %v995_v11, %v999_v12  ;;  %v1047_v1 = vld [vmem:[#allocation13 + $0x470] sm:$0xff]  ;;  %v3091_v2 = vcombine.low %v1035_v56, %v1039_v57  ;;  %v1044_v3 = vld [vmem:[#allocation13 + $0x458] sm:$0xff] }
 0x371   :  { %2737 = vmatprep.subr.bf16.mxu0 %v2998_v18  ;;  %v3054_v18 = vcombine.high %v996_v27, %v1000_v14 }
 0x373   :  { %2656 = vmatpush1.bf16.msra.mxu1 %v2995_v23  ;;  %v3051_v23 = vcombine.low %v995_v11, %v999_v12  ;;  %v1055_v11 = vld [vmem:[#allocation13 + $0x4b0] sm:$0xff] }
 0x374   :  { %2738 = vmatpush1.bf16.msra.mxu0 %v2997_v24  ;;  %2657 = vmatprep.subr.bf16.mxu1 %v3004_v25  ;;  %v3053_v24 = vcombine.low %v996_v27, %v1000_v14  ;;  %v3060_v25 = vcombine.high %v1003_v19, %v1007_v20  ;;  %v1052_v27 = vld [vmem:[#allocation13 + $0x498] sm:$0xff] }
 0x375   :  { %2739 = vmatprep.subr.bf16.mxu0 %v3006_v26  ;;  %v3062_v26 = vcombine.high %v1004_v21, %v1008_v22  ;;  %v1056_v14 = vld [vmem:[#allocation13 + $0x4b8] sm:$0xff] }
 0x377   :  { %2658 = vmatpush1.bf16.msra.mxu1 %v3003_v33  ;;  %v3059_v33 = vcombine.low %v1003_v19, %v1007_v20  ;;  %v1059_v19 = vld [vmem:[#allocation13 + $0x4d0] sm:$0xff] }
 0x378   :  { %2740 = vmatpush1.bf16.msra.mxu0 %v3005_v34  ;;  %2659 = vmatprep.subr.bf16.mxu1 %v3012_v36  ;;  %v3061_v34 = vcombine.low %v1004_v21, %v1008_v22  ;;  %v3068_v36 = vcombine.high %v1011_v29, %v1015_v30  ;;  %v1063_v20 = vld [vmem:[#allocation13 + $0x4f0] sm:$0xff]  ;;  %v1060_v21 = vld [vmem:[#allocation13 + $0x4d8] sm:$0xff] }
 0x379   :  { %2741 = vmatprep.subr.bf16.mxu0 %v3014_v37  ;;  %v3070_v37 = vcombine.high %v1012_v31, %v1016_v32  ;;  %v1064_v22 = vld [vmem:[#allocation13 + $0x4f8] sm:$0xff] }
 0x37b   :  { %2660 = vmatpush1.bf16.msra.mxu1 %v3011_v41  ;;  %v3067_v41 = vcombine.low %v1011_v29, %v1015_v30  ;;  %v1071_v29 = vld [vmem:[#allocation13 + $0x530] sm:$0xff]  ;;  %v1068_v30 = vld [vmem:[#allocation13 + $0x518] sm:$0xff] }
 0x37c   :  { %2742 = vmatpush1.bf16.msra.mxu0 %v3013_v42  ;;  %2661 = vmatprep.subr.bf16.mxu1 %v3020_v43  ;;  %v3069_v42 = vcombine.low %v1012_v31, %v1016_v32  ;;  %v3076_v43 = vcombine.high %v1019_v4, %v1023_v38  ;;  %v1072_v31 = vld [vmem:[#allocation13 + $0x538] sm:$0xff]  ;;  %v3117_v32 = vcombine.low %v1060_v21, %v1064_v22 }
 0x37d   :  { %2743 = vmatprep.subr.bf16.mxu0 %v3022_v44  ;;  %v3078_v44 = vcombine.high %v1020_v39, %v1024_v40 }
 0x37f   :  { %2662 = vmatpush1.bf16.msra.mxu1 %v3019_v51  ;;  %v3075_v51 = vcombine.low %v1019_v4, %v1023_v38  ;;  %v1076_v4 = vld [vmem:[#allocation13 + $0x558] sm:$0xff] }
 0x380   :  { %2744 = vmatpush1.bf16.msra.mxu0 %v3021_v53  ;;  %2663 = vmatprep.subr.bf16.mxu1 %v3028_v54  ;;  %v3077_v53 = vcombine.low %v1020_v39, %v1024_v40  ;;  %v3084_v54 = vcombine.high %v1027_v45, %v1031_v48  ;;  %v1080_v38 = vld [vmem:[#allocation13 + $0x578] sm:$0xff]  ;;  %v3125_v40 = vcombine.low %v1068_v30, %v1072_v31 }
 0x381   :  { %2745 = vmatprep.subr.bf16.mxu0 %v3030_v55  ;;  %v3086_v55 = vcombine.high %v1028_v10, %v1032_v50 }
 0x383   :  { %2664 = vmatpush1.bf16.msra.mxu1 %v3027_v60  ;;  %v3083_v60 = vcombine.low %v1027_v45, %v1031_v48  ;;  %v1084_v45 = vld [vmem:[#allocation13 + $0x598] sm:$0xff] }
 0x384   :  { %2746 = vmatpush1.bf16.msra.mxu0 %v3029_v61  ;;  %2665 = vmatprep.subr.bf16.mxu1 %v3036_v62  ;;  %v3085_v61 = vcombine.low %v1028_v10, %v1032_v50  ;;  %v3092_v62 = vcombine.high %v1035_v56, %v1039_v57  ;;  %v1088_v48 = vld [vmem:[#allocation13 + $0x5b8] sm:$0xff]  ;;  %v3133_v50 = vcombine.low %v1076_v4, %v1080_v38 }
 0x385   :  { %2747 = vmatprep.subr.bf16.mxu0 %v3038_v63  ;;  %v3094_v63 = vcombine.high %v1036_v58, %v1040_v59  ;;  %v1092_v56 = vld [vmem:[#allocation13 + $0x5d8] sm:$0xff] }
 0x386   :  { %v1096_v57 = vld [vmem:[#allocation13 + $0x5f8] sm:$0xff] }
 0x387   :  { %2666 = vmatpush1.bf16.msra.mxu1 %v3035_v6  ;;  %v1048_v6 = vld [vmem:[#allocation13 + $0x478] sm:$0xff] }
 0x388   :  { %2748 = vmatpush1.bf16.msra.mxu0 %v3037_v7  ;;  %2667 = vmatprep.subr.bf16.mxu1 %v3044_v8  ;;  %v3093_v7 = vcombine.low %v1036_v58, %v1040_v59  ;;  %v3100_v8 = vcombine.high %v1043_v0, %v1047_v1  ;;  %v3102_v12 = vcombine.high %v1044_v3, %v1048_v6 }
 0x389   :  { %2749 = vmatprep.subr.bf16.mxu0 %v3046_v9  ;;  %v1051_v9 = vld [vmem:[#allocation13 + $0x490] sm:$0xff]  ;;  %v3141_v59 = vcombine.low %v1084_v45, %v1088_v48 }
 0x38b   :  { %2668 = vmatpush1.bf16.msra.mxu1 %v3043_v15  ;;  %v3099_v15 = vcombine.low %v1043_v0, %v1047_v1  ;;  %v1100_v0 = vld [vmem:[#allocation13 + $0x618] sm:$0xff] }
 0x38c   :  { %2750 = vmatpush1.bf16.msra.mxu0 %v3045_v16  ;;  %2669 = vmatprep.subr.bf16.mxu1 %v3052_v17  ;;  %v3101_v16 = vcombine.low %v1044_v3, %v1048_v6  ;;  %v3108_v17 = vcombine.high %v1051_v9, %v1055_v11  ;;  %v1104_v1 = vld [vmem:[#allocation13 + $0x638] sm:$0xff]  ;;  %v3149_v3 = vcombine.low %v1092_v56, %v1096_v57 }
 0x38d   :  { %2751 = vmatprep.subr.bf16.mxu0 %v3054_v18  ;;  %v3110_v18 = vcombine.high %v1052_v27, %v1056_v14 }
 0x38f   :  { %2670 = vmatpush1.bf16.msra.mxu1 %v3051_v23  ;;  %v3107_v23 = vcombine.low %v1051_v9, %v1055_v11  ;;  %v1111_v9 = vld [vmem:[#allocation13 + $0x670] sm:$0xff]  ;;  %v1108_v11 = vld [vmem:[#allocation13 + $0x658] sm:$0xff] }
 0x390   :  { %2752 = vmatpush1.bf16.msra.mxu0 %v3053_v24  ;;  %2671 = vmatprep.subr.bf16.mxu1 %v3060_v25  ;;  %v3116_v24 = vcombine.high %v1059_v19, %v1063_v20  ;;  %v3118_v25 = vcombine.high %v1060_v21, %v1064_v22 }
 0x391   :  { %2753 = vmatprep.subr.bf16.mxu0 %v3062_v26  ;;  %v1067_v26 = vld [vmem:[#allocation13 + $0x510] sm:$0xff] }
 0x392   :  { %v3123_v39 = vcombine.low %v1067_v26, %v1071_v29 }
 0x393   :  { %2672 = vmatpush1.bf16.msra.mxu1 %v3059_v33  ;;  %v3124_v33 = vcombine.high %v1067_v26, %v1071_v29  ;;  %v1124_v26 = vld [vmem:[#allocation13 + $0x6d8] sm:$0xff] }
 0x394   :  { %2754 = vmatpush1.bf16.msra.mxu0 %v3061_v34  ;;  %2673 = vmatprep.subr.bf16.mxu1 %v3068_v36  ;;  %v3126_v34 = vcombine.high %v1068_v30, %v1072_v31  ;;  %v1075_v36 = vld [vmem:[#allocation13 + $0x550] sm:$0xff]  ;;  %v1128_v29 = vld [vmem:[#allocation13 + $0x6f8] sm:$0xff] }
 0x395   :  { %2755 = vmatprep.subr.bf16.mxu0 %v3070_v37  ;;  %v1079_v37 = vld [vmem:[#allocation13 + $0x570] sm:$0xff] }
 0x396   :  { %v3131_v10 = vcombine.low %v1075_v36, %v1079_v37 }
 0x397   :  { %2674 = vmatpush1.bf16.msra.mxu1 %v3067_v41  ;;  %v3132_v41 = vcombine.high %v1075_v36, %v1079_v37  ;;  %v1132_v36 = vld [vmem:[#allocation13 + $0x718] sm:$0xff] }
 0x398   :  { %2756 = vmatpush1.bf16.msra.mxu0 %v3069_v42  ;;  %2675 = vmatprep.subr.bf16.mxu1 %v3076_v43  ;;  %v3134_v42 = vcombine.high %v1076_v4, %v1080_v38  ;;  %v1083_v43 = vld [vmem:[#allocation13 + $0x590] sm:$0xff]  ;;  %v1136_v37 = vld [vmem:[#allocation13 + $0x738] sm:$0xff]  ;;  %v3181_v38 = vcombine.low %v1124_v26, %v1128_v29 }
 0x399   :  { %2757 = vmatprep.subr.bf16.mxu0 %v3078_v44  ;;  %v1087_v44 = vld [vmem:[#allocation13 + $0x5b0] sm:$0xff] }
 0x39a   :  { %v3139_v58 = vcombine.low %v1083_v43, %v1087_v44 }
 0x39b   :  { %2676 = vmatpush1.bf16.msra.mxu1 %v3075_v51  ;;  %v3140_v51 = vcombine.high %v1083_v43, %v1087_v44  ;;  %v1140_v43 = vld [vmem:[#allocation13 + $0x758] sm:$0xff] }
 0x39c   :  { %2758 = vmatpush1.bf16.msra.mxu0 %v3077_v53  ;;  %2677 = vmatprep.subr.bf16.mxu1 %v3084_v54  ;;  %v3142_v53 = vcombine.high %v1084_v45, %v1088_v48  ;;  %v1091_v54 = vld [vmem:[#allocation13 + $0x5d0] sm:$0xff]  ;;  %v1144_v44 = vld [vmem:[#allocation13 + $0x778] sm:$0xff]  ;;  %v3189_v48 = vcombine.low %v1132_v36, %v1136_v37 }
 0x39d   :  { %2759 = vmatprep.subr.bf16.mxu0 %v3086_v55  ;;  %v1095_v55 = vld [vmem:[#allocation13 + $0x5f0] sm:$0xff] }
 0x39f   :  { %2678 = vmatpush1.bf16.msra.mxu1 %v3083_v60  ;;  %v3148_v60 = vcombine.high %v1091_v54, %v1095_v55 }
 0x3a0   :  { %2760 = vmatpush1.bf16.msra.mxu0 %v3085_v61  ;;  %2688 = vmatprep.subr.bf16.mxu1 %v3092_v62  ;;  %v3150_v61 = vcombine.high %v1092_v56, %v1096_v57  ;;  %v1099_v62 = vld [vmem:[#allocation13 + $0x610] sm:$0xff]  ;;  %v3197_v57 = vcombine.low %v1140_v43, %v1144_v44 }
 0x3a1   :  { %2770 = vmatprep.subr.bf16.mxu0 %v3094_v63  ;;  %v1103_v63 = vld [vmem:[#allocation13 + $0x630] sm:$0xff] }
 0x3a2   :  { %2680 = vmatmul.mubr.bf16.vlgmr.msra.gmra.mrb[16].mxu1 %v3792_v28  ;;  %v3156_v6 = vcombine.high %v1099_v62, %v1103_v63 }
 0x3a3   :  { %2762 = vmatmul.mubr.bf16.vlgmr.msra.gmra.mrb[12].mxu0 %v3792_v28  ;;  %2689 = vmatpush1.bf16.msra.mxu1 %v3091_v2  ;;  %v3109_v28 = vcombine.low %v1052_v27, %v1056_v14  ;;  %v3147_v2 = vcombine.low %v1091_v54, %v1095_v55  ;;  %v3155_v27 = vcombine.low %v1099_v62, %v1103_v63  ;;  %v1148_v54 = vld [vmem:[#allocation13 + $0x798] sm:$0xff] }
 0x3a4   :  { %2720 = vmatprep.mubr.bf16.mxu1 %v3796_v35  ;;  %2771 = vmatpush1.bf16.msra.mxu0 %v3093_v7  ;;  %v3158_v7 = vcombine.high %v1100_v0, %v1104_v1  ;;  %v3157_v14 = vcombine.low %v1100_v0, %v1104_v1  ;;  %v1152_v55 = vld [vmem:[#allocation13 + $0x7b8] sm:$0xff] }
 0x3a5   :  { %2802 = vmatprep.mubr.bf16.mxu0 %v3796_v35  ;;  %2690 = vmatprep.subr.bf16.mxu1 %v3100_v8  ;;  %v3115_v35 = vcombine.low %v1059_v19, %v1063_v20  ;;  %v1107_v8 = vld [vmem:[#allocation13 + $0x650] sm:$0xff]  ;;  %v1116_v19 = vld [vmem:[#allocation13 + $0x698] sm:$0xff]  ;;  %v3205_v1 = vcombine.low %v1148_v54, %v1152_v55 }
 0x3a6   :  { %2772 = vmatprep.subr.bf16.mxu0 %v3102_v12  ;;  %v1112_v12 = vld [vmem:[#allocation13 + $0x678] sm:$0xff]  ;;  %v3163_v21 = vcombine.low %v1107_v8, %v1111_v9 }
 0x3a7   :  { %2691 = vmatpush1.bf16.msra.mxu1 %v3099_v15  ;;  %v3164_v15 = vcombine.high %v1107_v8, %v1111_v9  ;;  %v1120_v20 = vld [vmem:[#allocation13 + $0x6b8] sm:$0xff]  ;;  %v3165_v22 = vcombine.low %v1108_v11, %v1112_v12 }
 0x3a8   :  { %2773 = vmatpush1.bf16.msra.mxu0 %v3101_v16  ;;  %2692 = vmatprep.subr.bf16.mxu1 %v3108_v17  ;;  %v3166_v16 = vcombine.high %v1108_v11, %v1112_v12  ;;  %v1115_v17 = vld [vmem:[#allocation13 + $0x690] sm:$0xff]  ;;  %v3173_v31 = vcombine.low %v1116_v19, %v1120_v20  ;;  %v1156_v62 = vld [vmem:[#allocation13 + $0x7d8] sm:$0xff] }
 0x3a9   :  { %2774 = vmatprep.subr.bf16.mxu0 %v3110_v18  ;;  %v1119_v18 = vld [vmem:[#allocation13 + $0x6b0] sm:$0xff]  ;;  %v1160_v63 = vld [vmem:[#allocation13 + $0x7f8] sm:$0xff] }
 0x3aa   :  { %v3171_v30 = vcombine.low %v1115_v17, %v1119_v18  ;;  %v1161_v8 = vld [vmem:[%s3854_s10] sm:$0xff]  ;;  %s3612_s10 = smov [#allocation14]  }
 0x3ab   :  { %2693 = vmatpush1.bf16.msra.mxu1 %v3107_v23  ;;  %v3172_v23 = vcombine.high %v1115_v17, %v1119_v18  ;;  %v1166_v9 = vrot.slane %v1161_v8, %v3765_v47  ;;  %v1174_v11 = vrot.slane %v1161_v8, %v485_v13  ;;  %v1170_v12 = vrot.slane %v1161_v8, %v3771_v49  ;;  %s2861_s7 = sshll.u32 %s3612_s10, 4  ;;  %s2862_s7 = int_to_ptr.vmem [resolvable:$true] %s2861_s7 }
 0x3ac   :  { %2775 = vmatpush1.bf16.msra.mxu0 %v3109_v28  ;;  %2694 = vmatprep.subr.bf16.mxu1 %v3116_v24  ;;  %v3174_v28 = vcombine.high %v1116_v19, %v1120_v20  ;;  %v1123_v24 = vld [vmem:[#allocation13 + $0x6d0] sm:$0xff]  ;;  %s3562_s24 = scalar_lea.vmem %s2862_s7, 512  ;;  %p3567_p1 = scmp.lt.s32.totalorder %s2862_s7, %s2862_s7 }
 0x3ad   :  { %2776 = vmatprep.subr.bf16.mxu0 %v3118_v25  ;;  %v1127_v25 = vld [vmem:[#allocation13 + $0x6f0] sm:$0xff]  ;;  %p3563_p0 = scmp.ne.s32.totalorder %s2862_s7, %s3562_s24  ;;  %p3568_p2 = scmp.lt.s32.totalorder %s3562_s24, %s3562_s24 }
 0x3ae   :  { %v3179_v4 = vcombine.low %v1123_v24, %v1127_v25 }
 0x3af   :  { %2695 = vmatpush1.bf16.msra.mxu1 %v3115_v35  ;;  %v3180_v35 = vcombine.high %v1123_v24, %v1127_v25  ;;  %p3569_p3 = por %p3568_p2, %p3567_p1 }
 0x3b0   :  { %2777 = vmatpush1.bf16.msra.mxu0 %v3117_v32  ;;  %2696 = vmatprep.subr.bf16.mxu1 %v3124_v33  ;;  %v3182_v32 = vcombine.high %v1124_v26, %v1128_v29  ;;  %v1131_v33 = vld [vmem:[#allocation13 + $0x710] sm:$0xff]  ;;  %v1189_v29 = vsub.s32 6, %v3762_v46 }
 0x3b1   :  { %2778 = vmatprep.subr.bf16.mxu0 %v3126_v34  ;;  %v1135_v34 = vld [vmem:[#allocation13 + $0x730] sm:$0xff]  ;;  %p3570_p4 = pnand %p3569_p3, %p3563_p0 }
 0x3b2   :  { %v3187_v45 = vcombine.low %v1131_v33, %v1135_v34 }
 0x3b3   :  { %2697 = vmatpush1.bf16.msra.mxu1 %v3123_v39  ;;  %v3188_v39 = vcombine.high %v1131_v33, %v1135_v34 }
 0x3b4   :  { %2779 = vmatpush1.bf16.msra.mxu0 %v3125_v40  ;;  %2698 = vmatprep.subr.bf16.mxu1 %v3132_v41  ;;  %v3190_v40 = vcombine.high %v1132_v36, %v1136_v37  ;;  %v1139_v41 = vld [vmem:[#allocation13 + $0x750] sm:$0xff] }
 0x3b5   :  { %2780 = vmatprep.subr.bf16.mxu0 %v3134_v42  ;;  %v1143_v42 = vld [vmem:[#allocation13 + $0x770] sm:$0xff] }
 0x3b6   :  { %v3195_v56 = vcombine.low %v1139_v41, %v1143_v42 }
 0x3b7   :  { %2699 = vmatpush1.bf16.msra.mxu1 %v3131_v10  ;;  %v3196_v10 = vcombine.high %v1139_v41, %v1143_v42 }
 0x3b8   :  { %2781 = vmatpush1.bf16.msra.mxu0 %v3133_v50  ;;  %2700 = vmatprep.subr.bf16.mxu1 %v3140_v51  ;;  %v3198_v50 = vcombine.high %v1140_v43, %v1144_v44  ;;  %v1147_v51 = vld [vmem:[#allocation13 + $0x790] sm:$0xff] }
 0x3b9   :  { %2782 = vmatprep.subr.bf16.mxu0 %v3142_v53  ;;  %v1151_v53 = vld [vmem:[#allocation13 + $0x7b0] sm:$0xff] }
 0x3ba   :  { %v3203_v0 = vcombine.low %v1147_v51, %v1151_v53 }
 0x3bb   :  { %2701 = vmatpush1.bf16.msra.mxu1 %v3139_v58  ;;  %v3204_v58 = vcombine.high %v1147_v51, %v1151_v53 }
 0x3bc   :  { %2783 = vmatpush1.bf16.msra.mxu0 %v3141_v59  ;;  %2702 = vmatprep.subr.bf16.mxu1 %v3148_v60  ;;  %v3206_v59 = vcombine.high %v1148_v54, %v1152_v55  ;;  %v1155_v60 = vld [vmem:[#allocation13 + $0x7d0] sm:$0xff] }
 0x3bd   :  { %2784 = vmatprep.subr.bf16.mxu0 %v3150_v61  ;;  %v1159_v61 = vld [vmem:[#allocation13 + $0x7f0] sm:$0xff] }
 0x3bf   :  { %2703 = vmatpush1.bf16.msra.mxu1 %v3147_v2  ;;  %v3212_v2 = vcombine.high %v1155_v60, %v1159_v61 }
 0x3c0   :  { %2785 = vmatpush1.bf16.msra.mxu0 %v3149_v3  ;;  %2704 = vmatprep.subr.bf16.mxu1 %v3156_v6  ;;  %v3214_v3 = vcombine.high %v1156_v62, %v1160_v63  ;;  %v3211_v6 = vcombine.low %v1155_v60, %v1159_v61 }
 0x3c1   :  { %2786 = vmatprep.subr.bf16.mxu0 %v3158_v7  ;;  %v3213_v7 = vcombine.low %v1156_v62, %v1160_v63 }
 0x3c3   :  { %2705 = vmatpush1.bf16.msra.mxu1 %v3155_v27  ;;  %v1178_v27 = vrot.slane %v1161_v8, %v489_v5  ;;  %v1181_v5 = vsub.s32 4, %v3762_v46 }
 0x3c4   :  { %2787 = vmatpush1.bf16.msra.mxu0 %v3157_v14  ;;  %2706 = vmatprep.subr.bf16.mxu1 %v3164_v15 }
 0x3c5   :  { %2788 = vmatprep.subr.bf16.mxu0 %v3166_v16 }
 0x3c7   :  { %2707 = vmatpush1.bf16.msra.mxu1 %v3163_v21 }
 0x3c8   :  { %2789 = vmatpush1.bf16.msra.mxu0 %v3165_v22  ;;  %2708 = vmatprep.subr.bf16.mxu1 %v3172_v23 }
 0x3c9   :  { %2790 = vmatprep.subr.bf16.mxu0 %v3174_v28 }
 0x3cb   :  { %2709 = vmatpush1.bf16.msra.mxu1 %v3171_v30  ;;  %v1185_v30 = vsub.s32 5, %v3762_v46 }
 0x3cc   :  { %2791 = vmatpush1.bf16.msra.mxu0 %v3173_v31  ;;  %2710 = vmatprep.subr.bf16.mxu1 %v3180_v35  ;;  %v1193_v31 = vsub.s32 7, %v3762_v46  ;;  %v1182_v35 = vrot.slane %v1161_v8, %v1181_v5 }
 0x3cd   :  { %2792 = vmatprep.subr.bf16.mxu0 %v3182_v32  ;;  %v1190_v32 = vrot.slane %v1161_v8, %v1189_v29  ;;  %v1186_v33 = vrot.slane %v1161_v8, %v1185_v30 }
 0x3ce   :  { %v1194_v34 = vrot.slane %v1161_v8, %v1193_v31 }
 0x3cf   :  { %2711 = vmatpush1.bf16.msra.mxu1 %v3179_v4 }
 0x3d0   :  { %2793 = vmatpush1.bf16.msra.mxu0 %v3181_v38  ;;  %2712 = vmatprep.subr.bf16.mxu1 %v3188_v39 }
 0x3d1   :  { %2794 = vmatprep.subr.bf16.mxu0 %v3190_v40 }
 0x3d3   :  { %2713 = vmatpush1.bf16.msra.mxu1 %v3187_v45 }
 0x3d4   :  { %2795 = vmatpush1.bf16.msra.mxu0 %v3189_v48  ;;  %2714 = vmatprep.subr.bf16.mxu1 %v3196_v10 }
 0x3d5   :  { %2796 = vmatprep.subr.bf16.mxu0 %v3198_v50 }
 0x3d7   :  { %2715 = vmatpush1.bf16.msra.mxu1 %v3195_v56 }
 0x3d8   :  { %2797 = vmatpush1.bf16.msra.mxu0 %v3197_v57  ;;  %2716 = vmatprep.subr.bf16.mxu1 %v3204_v58 }
 0x3d9   :  { %2798 = vmatprep.subr.bf16.mxu0 %v3206_v59 }
 0x3db   :  { %2717 = vmatpush1.bf16.msra.mxu1 %v3203_v0 }
 0x3dc   :  { %2799 = vmatpush1.bf16.msra.mxu0 %v3205_v1  ;;  %2718 = vmatprep.subr.bf16.mxu1 %v3212_v2 }
 0x3dd   :  { %2800 = vmatprep.subr.bf16.mxu0 %v3214_v3 }
 0x3df   :  { %2719 = vmatpush1.bf16.msra.mxu1 %v3211_v6 }
 0x3e0   :  { %2801 = vmatpush1.bf16.msra.mxu0 %v3213_v7 }
 0x3e2   :  { %2721 = vmatmul.mubr.bf16.vlgmr.msra.gmra.mrb[16].mxu1 %v3807_v52 }
 0x3e3   :  { %2803 = vmatmul.mubr.bf16.vlgmr.msra.gmra.mrb[12].mxu0 %v3807_v52 }
 0x435   :  { %v2558_v14 = vpop.f32.mrb[12].mxu1  ;;  %v2640_v15 = vpop.f32.mrb[8].mxu0 }
 0x436   :  { %v3242_v16 = vadd.f32 %v2558_v14, %v1166_v9  ;;  %v3244_v17 = vadd.f32 %v2640_v15, %v1174_v11  ;;  %v2560_v18 = vpop.f32.mrb[13].mxu1  ;;  %v2642_v52 = vpop.f32.mrb[9].mxu0 }
 0x437   :  { %v3243_v19 = vadd.f32 %v2560_v18, %v1170_v12  ;;  %v3245_v20 = vadd.f32 %v2642_v52, %v1178_v27  ;;  %v2562_v21 = vpop.f32.mrb[14].mxu1  ;;  %v2644_v22 = vpop.f32.mrb[10].mxu0 }
 0x438   :  { %v2811_v23 = vmax.f32 %v3242_v16, 0.0  ;;  %v2813_v47 = vmax.f32 %v3244_v17, 0.0  ;;  %v2563_v28 = vpop.f32.mrb[15].mxu1  ;;  %v2645_v24 = vpop.f32.mrb[11].mxu0 }
 0x439   :  { %v2812_v13 = vmax.f32 %v3243_v19, 0.0  ;;  %v2814_v25 = vmax.f32 %v3245_v20, 0.0 }
 0x43b   :  { %v3219_v49 = vpack.c.bf16 %v2812_v13, %v2811_v23  ;;  %v3220_v26 = vpack.c.bf16 %v2814_v25, %v2813_v47 }
 0x43d   :  { %2851 = vst [vmem:[#allocation14] sm:$0xff] %v3219_v49  ;;  %2852 = vst [vmem:[#allocation14 + $0x8] sm:$0xff] %v3220_v26 }
 0x4b5   :  { %v2722_v36 = vpop.f32.mrb[16].mxu1 }
 0x4b6   :  { %v3246_v37 = vadd.f32 %v2722_v36, %v1182_v35  ;;  %v2804_v4 = vpop.f32.mrb[12].mxu0  ;;  %v2724_v38 = vpop.f32.mrb[17].mxu1 }
 0x4b7   :  { %v3248_v39 = vadd.f32 %v2804_v4, %v1190_v32  ;;  %v3247_v40 = vadd.f32 %v2724_v38, %v1186_v33  ;;  %v2806_v41 = vpop.f32.mrb[13].mxu0  ;;  %v2726_v42 = vpop.f32.mrb[18].mxu1 }
 0x4b8   :  { %v2815_v43 = vmax.f32 %v3246_v37, 0.0  ;;  %v3249_v44 = vadd.f32 %v2806_v41, %v1194_v34  ;;  %v2808_v45 = vpop.f32.mrb[14].mxu0  ;;  %v2727_v48 = vpop.f32.mrb[19].mxu1 }
 0x4b9   :  { %v2817_v10 = vmax.f32 %v3248_v39, 0.0  ;;  %v2816_v50 = vmax.f32 %v3247_v40, 0.0  ;;  %v2809_v51 = vpop.f32.mrb[15].mxu0 }
 0x4ba   :  { %v2818_v46 = vmax.f32 %v3249_v44, 0.0 }
 0x4bb   :  { %v3221_v53 = vpack.c.bf16 %v2816_v50, %v2815_v43 }
 0x4bc   :  { %v3222_v54 = vpack.c.bf16 %v2818_v46, %v2817_v10 }
 0x4bd   :  { %2853 = vst [vmem:[#allocation14 + $0x10] sm:$0xff] %v3221_v53 }
 0x4be   :  { %2854 = vst [vmem:[#allocation14 + $0x18] sm:$0xff] %v3222_v54 }
 0x4bf   :  { %3573 = shalt.err (!%p3570_p4)
}
 0x4c0   :  { %s3574_s21 = scalar_lea.hbm %s3855_s11, 512 }
 0x4c1   :  { %p3575_p5 = scmp.ne.s32.totalorder %s3855_s11, %s3574_s21  ;;  %p3578_p6 = scmp.lt.u32.totalorder %s3574_s21, %s3855_s11 }
 0x4c3   :  { %p3580_p7 = pnand %p3578_p6, %p3575_p5 }
 0x4c5   :  { %3583 = shalt.err (!%p3580_p7)
}
 0x4c6   :  { %2864 = dma.vmem_to_hbm [thread:$0]  %s2862_s7, 512, %s3855_s11, [#allocation4]  }
 0x4c7   :  { %3592 = dma.done.wait [#allocation4], 512  }
 0x4c8   :  { %3593 = vsyncadd [#allocation4], 4294966784 }
 0x4c9   :  { %2868 = vsyncpa [#allocation3], 1 }
 0x4ca   :  { %2869 = vsyncpa [#allocation6], 1 }
 0x4cb   :  { %2870 = vsyncpa [#allocation9], 1 }
 0x4cc   :  { %2871 = vsyncpa [#allocation12], 1 }
 0x4cd   :  { %2872 = vsyncpa [#allocation4], 1 }

</bundles_post_ra>
